<compile_context>
chip_gen: v7x
topology: tpu7x:2x2x1
jax: 0.10.0
libtpu: 0.0.40
codegen_flags: <defaults>
</compile_context>

<pallas_src>
import functools

import numpy as np
import jax
import jax.numpy as jnp
from jax.experimental import pallas as pl
from jax.experimental.pallas import tpu as pltpu


def _bottleneck_kernel(x_ref, masks_ref, w1_ref, b1_ref, w2_ref, b2_ref, o_ref,
                       slab1_ref, slab2_ref, *, W, add, approx_silu):
    """Fused cv1 -> cv2 (-> +x) for the whole (folded) batch.

    x_ref    : (N, C1, H*W)    flattened NCHW input
    masks_ref: (9, H*W)        f32 border masks (implicit zero padding), per tap
    w1_ref   : (C_, 9*C1)      cv1 weights, BN folded, column = tap*C1 + cin
    b1_ref   : (C_, 1)         cv1 folded BN bias (f32)
    w2_ref   : (C2, 9*C_)      cv2 weights, BN folded
    b2_ref   : (C2, 1)         cv2 folded BN bias (f32)
    o_ref    : (N, C2, H*W)
    slab1_ref: (9*C1, N*H*W)   VMEM scratch, compute dtype
    slab2_ref: (9*C_, N*H*W)   VMEM scratch, compute dtype
    """
    N, C1, HW = x_ref.shape

    def silu(y):
        if approx_silu:
            # exp + reciprocal both live on the EUP slot (VPU stays free).
            return y * pl.reciprocal(1.0 + jnp.exp(-y), approx=True)
        return y * jax.nn.sigmoid(y)

    def fill_slab(slab_ref, img, n, cin):
        # img: (cin, HW) f32 for image n.  Writes the 9 rolled+masked taps into
        # rows [tap*cin:(tap+1)*cin], columns [n*HW:(n+1)*HW] of the slab.
        col = slice(n * HW, (n + 1) * HW)          # 256-lane aligned
        for tap in range(9):
            dh = tap // 3 - 1
            dw = tap % 3 - 1
            d = dh * W + dw                        # flat spatial offset
            if d == 0:
                s = img                            # center tap: no shift/mask
            else:
                # out[hw] must see img[hw + d]; roll + mask == zero padding.
                s = pltpu.roll(img, shift=(-d) % HW, axis=1) \
                    * masks_ref[tap:tap + 1, :]
            slab_ref[tap * cin:(tap + 1) * cin, col] = s.astype(slab_ref.dtype)

    # ---------- cv1: slab assembly -> ONE MXU matmul -> bias + SiLU ----------
    for n in range(N):
        fill_slab(slab1_ref, x_ref[n].astype(jnp.float32), n, C1)
    h1 = jnp.dot(w1_ref[...], slab1_ref[...],
                 preferred_element_type=jnp.float32) + b1_ref[...]
    h1 = silu(h1)                                   # (C_, N*HW) f32

    # ---------- cv2 ----------
    C_ = w1_ref.shape[0]
    for n in range(N):
        fill_slab(slab2_ref, h1[:, n * HW:(n + 1) * HW], n, C_)
    y = jnp.dot(w2_ref[...], slab2_ref[...],
                preferred_element_type=jnp.float32) + b2_ref[...]
    y = silu(y)                                     # (C2, N*HW) f32

    # ---------- residual + store (lane-dense: 256-wide rows) ----------
    for n in range(N):
        yn = y[:, n * HW:(n + 1) * HW]
        if add:
            yn = yn + x_ref[n].astype(jnp.float32)
        o_ref[n] = yn.astype(o_ref.dtype)


def _make_tap_masks(H, W):
    """(9, H*W) f32 masks: 1 where the shifted tap stays inside the image."""
    m = np.zeros((9, H * W), np.float32)
    hh, ww = np.meshgrid(np.arange(H), np.arange(W), indexing="ij")
    for tap in range(9):
        dh = tap // 3 - 1
        dw = tap % 3 - 1
        valid = (hh + dh >= 0) & (hh + dh < H) & (ww + dw >= 0) & (ww + dw < W)
        m[tap] = valid.reshape(-1).astype(np.float32)
    return jnp.asarray(m)


def fold_bn(gamma, beta, running_mean, running_var, eps=1e-5):
    scale = gamma / jnp.sqrt(running_var + eps)
    bias = beta - running_mean * scale
    return scale, bias


def bottleneck_forward(x_nchw, params, shortcut=True,
                       compute_dtype=jnp.float32):
    """Bottleneck(c1, c2, shortcut=True, g=1, k=(3,3), e=0.5) forward.

    x_nchw: (N, C1, H, W) float32 (PyTorch layout).  Conv weights are PyTorch
    OIHW, bias-free.  BatchNorm is applied in inference mode (folded).
    `compute_dtype` controls the MXU operand dtype (f32 or bf16); accumulation
    and the epilogue stay f32.  Returns NCHW.
    """
    N, C1, H, W = x_nchw.shape
    HW = H * W
    NHW = N * HW
    w1 = params["w1"]                     # (C_, C1, 3, 3)
    w2 = params["w2"]                     # (C2, C_, 3, 3)
    C_ = w1.shape[0]
    C2 = w2.shape[0]
    add = shortcut and (C1 == C2)

    s1, b1 = fold_bn(params["g1"], params["b1"], params["m1"], params["v1"])
    s2, b2 = fold_bn(params["g2"], params["b2"], params["m2"], params["v2"])

    # Fold BN scale into the conv weights and flatten to (Cout, 9*Cin) with
    # column index tap*Cin + cin, matching the in-kernel slab row order, so
    # each conv is a single K=9*Cin MXU matmul.
    w1c = jnp.transpose(w1 * s1[:, None, None, None], (0, 2, 3, 1)) \
             .reshape(C_, 9 * C1).astype(compute_dtype)
    w2c = jnp.transpose(w2 * s2[:, None, None, None], (0, 2, 3, 1)) \
             .reshape(C2, 9 * C_).astype(compute_dtype)
    b1c = b1.reshape(C_, 1).astype(jnp.float32)
    b2c = b2.reshape(C2, 1).astype(jnp.float32)

    masks = _make_tap_masks(H, W)          # (9, HW) f32, dense 2-D
    x_flat = x_nchw.reshape(N, C1, HW)     # lane-dense, no wrapper transpose

    approx_silu = np.dtype(compute_dtype) != np.dtype(np.float32)
    kernel = functools.partial(_bottleneck_kernel, W=W, add=add,
                               approx_silu=approx_silu)

    # Single invocation (no grid): the whole batch fits comfortably in VMEM at
    # these sizes; constants are resident once (no double-buffering).
    out_flat = pl.pallas_call(
        kernel,
        out_shape=jax.ShapeDtypeStruct((N, C2, HW), x_nchw.dtype),
        scratch_shapes=[
            pltpu.VMEM((9 * C1, NHW), compute_dtype),   # cv1 stacked-tap slab
            pltpu.VMEM((9 * C_, NHW), compute_dtype),   # cv2 stacked-tap slab
        ],
        compiler_params=pltpu.CompilerParams(
            vmem_limit_bytes=32 * 1024 * 1024),
    )(x_flat, masks, w1c, b1c, w2c, b2c)

    return out_flat.reshape(N, C2, H, W)


def _reference(x_nchw, params, shortcut=True):
    """Pure-JAX reference (same inference-mode BN semantics)."""
    C1 = x_nchw.shape[1]
    C2 = params["w2"].shape[0]
    add = shortcut and (C1 == C2)

    def block(inp, w, gamma, beta, mean, var):
        out = jax.lax.conv_general_dilated(
            inp, w, window_strides=(1, 1), padding="SAME",
            dimension_numbers=("NCHW", "OIHW", "NCHW"))
        s, b = fold_bn(gamma, beta, mean, var)
        out = out * s[None, :, None, None] + b[None, :, None, None]
        return out * jax.nn.sigmoid(out)

    h = block(x_nchw, params["w1"], params["g1"], params["b1"],
              params["m1"], params["v1"])
    y = block(h, params["w2"], params["g2"], params["b2"],
              params["m2"], params["v2"])
    if add:
        y = y + x_nchw
    return y


if __name__ == "__main__":
    # Bottleneck(c1=4, c2=4, shortcut=True, g=1, k=(3,3), e=0.5) -> c_ = 2
    N, C1, H, W = 2, 4, 16, 16
    C2 = 4
    C_ = int(C2 * 0.5)

    key = jax.random.PRNGKey(0)
    k_x, k_w1, k_w2, k_g1, k_b1, k_g2, k_b2 = jax.random.split(key, 7)

    x = jax.random.normal(k_x, (N, C1, H, W), jnp.float32)

    params = {
        # conv weights in PyTorch OIHW layout; bias=False as in ConvBlock
        "w1": 0.1 * jax.random.normal(k_w1, (C_, C1, 3, 3), jnp.float32),
        "w2": 0.1 * jax.random.normal(k_w2, (C2, C_, 3, 3), jnp.float32),
        # BatchNorm params (inference: running_mean=0, running_var=1)
        "g1": 1.0 + 0.1 * jax.random.normal(k_g1, (C_,), jnp.float32),
        "b1": 0.1 * jax.random.normal(k_b1, (C_,), jnp.float32),
        "m1": jnp.zeros((C_,), jnp.float32),
        "v1": jnp.ones((C_,), jnp.float32),
        "g2": 1.0 + 0.1 * jax.random.normal(k_g2, (C2,), jnp.float32),
        "b2": 0.1 * jax.random.normal(k_b2, (C2,), jnp.float32),
        "m2": jnp.zeros((C2,), jnp.float32),
        "v2": jnp.ones((C2,), jnp.float32),
    }

    ref = jax.block_until_ready(_reference(x, params, shortcut=True))

    # f32 MXU-operand path: must match the reference tightly.
    out = jax.block_until_ready(bottleneck_forward(x, params, shortcut=True))
    assert out.shape == (N, C2, H, W)
    assert jnp.allclose(out, ref, atol=1e-4, rtol=1e-4), "f32 mismatch vs ref"

    # bf16 MXU-operand path (f32 accumulation): looser tolerance.
    out_bf16 = jax.block_until_ready(
        bottleneck_forward(x, params, shortcut=True,
                           compute_dtype=jnp.bfloat16))
    assert out_bf16.shape == (N, C2, H, W)
    assert jnp.allclose(out_bf16, ref, atol=5e-2, rtol=5e-2), \
        "bf16 mismatch vs ref"

    print("KERNEL_OK")
</pallas_src>

<mosaic_0001>
module attributes {stable_mosaic.version = 11 : i64} {
  func.func @_bottleneck_kernel(%arg0: memref<2x4x256xf32, #tpu.memory_space<vmem>>, %arg1: memref<9x256xf32, #tpu.memory_space<vmem>>, %arg2: memref<2x36xf32, #tpu.memory_space<vmem>>, %arg3: memref<2x1xf32, #tpu.memory_space<vmem>>, %arg4: memref<4x18xf32, #tpu.memory_space<vmem>>, %arg5: memref<4x1xf32, #tpu.memory_space<vmem>>, %arg6: memref<2x4x256xf32, #tpu.memory_space<vmem>>, %arg7: memref<36x512xf32, #tpu.memory_space<vmem>>, %arg8: memref<18x512xf32, #tpu.memory_space<vmem>>) attributes {dimension_semantics = [], scalar_prefetch = 0 : i64, scratch_operands = 2 : i64, tpu.core_type = #tpu.core_type<tc>} {
    %c0 = arith.constant 0 : index
    %c0_0 = arith.constant 0 : index
    %c0_1 = arith.constant 0 : index
    %0 = vector.load %arg0[%c0, %c0_0, %c0_1] : memref<2x4x256xf32, #tpu.memory_space<vmem>>, vector<1x4x256xf32>
    %1 = vector.shape_cast %0 : vector<1x4x256xf32> to vector<4x256xf32>
    %c17_i32 = arith.constant 17 : i32
    %2 = tpu.dynamic_rotate %1 by %c17_i32 dim 1 : vector<4x256xf32>, i32 -> vector<4x256xf32>
    %c0_2 = arith.constant 0 : index
    %c0_3 = arith.constant 0 : index
    %3 = vector.load %arg1[%c0_2, %c0_3] : memref<9x256xf32, #tpu.memory_space<vmem>>, vector<1x256xf32>
    %4 = vector.broadcast %3 : vector<1x256xf32> to vector<4x256xf32>
    %5 = arith.mulf %2, %4 : vector<4x256xf32>
    %c0_4 = arith.constant 0 : index
    %c0_5 = arith.constant 0 : index
    %6 = vector.load %arg7[%c0_4, %c0_5] : memref<36x512xf32, #tpu.memory_space<vmem>>, vector<4x256xf32>
    tpu.vector_store %arg7[%c0_4, %c0_5], %5 {strides = array<i32>} : memref<36x512xf32, #tpu.memory_space<vmem>>, vector<4x256xf32>,
    %c16_i32 = arith.constant 16 : i32
    %7 = tpu.dynamic_rotate %1 by %c16_i32 dim 1 : vector<4x256xf32>, i32 -> vector<4x256xf32>
    %c1 = arith.constant 1 : index
    %c0_6 = arith.constant 0 : index
    %8 = vector.load %arg1[%c1, %c0_6] : memref<9x256xf32, #tpu.memory_space<vmem>>, vector<1x256xf32>
    %9 = vector.broadcast %8 : vector<1x256xf32> to vector<4x256xf32>
    %10 = arith.mulf %7, %9 : vector<4x256xf32>
    %c4 = arith.constant 4 : index
    %c0_7 = arith.constant 0 : index
    %11 = vector.load %arg7[%c4, %c0_7] : memref<36x512xf32, #tpu.memory_space<vmem>>, vector<4x256xf32>
    tpu.vector_store %arg7[%c4, %c0_7], %10 {strides = array<i32>} : memref<36x512xf32, #tpu.memory_space<vmem>>, vector<4x256xf32>,
    %c15_i32 = arith.constant 15 : i32
    %12 = tpu.dynamic_rotate %1 by %c15_i32 dim 1 : vector<4x256xf32>, i32 -> vector<4x256xf32>
    %c2 = arith.constant 2 : index
    %c0_8 = arith.constant 0 : index
    %13 = vector.load %arg1[%c2, %c0_8] : memref<9x256xf32, #tpu.memory_space<vmem>>, vector<1x256xf32>
    %14 = vector.broadcast %13 : vector<1x256xf32> to vector<4x256xf32>
    %15 = arith.mulf %12, %14 : vector<4x256xf32>
    %c8 = arith.constant 8 : index
    %c0_9 = arith.constant 0 : index
    %16 = vector.load %arg7[%c8, %c0_9] : memref<36x512xf32, #tpu.memory_space<vmem>>, vector<4x256xf32>
    tpu.vector_store %arg7[%c8, %c0_9], %15 {strides = array<i32>} : memref<36x512xf32, #tpu.memory_space<vmem>>, vector<4x256xf32>,
    %c1_i32 = arith.constant 1 : i32
    %17 = tpu.dynamic_rotate %1 by %c1_i32 dim 1 : vector<4x256xf32>, i32 -> vector<4x256xf32>
    %c3 = arith.constant 3 : index
    %c0_10 = arith.constant 0 : index
    %18 = vector.load %arg1[%c3, %c0_10] : memref<9x256xf32, #tpu.memory_space<vmem>>, vector<1x256xf32>
    %19 = vector.broadcast %18 : vector<1x256xf32> to vector<4x256xf32>
    %20 = arith.mulf %17, %19 : vector<4x256xf32>
    %c12 = arith.constant 12 : index
    %c0_11 = arith.constant 0 : index
    %21 = vector.load %arg7[%c12, %c0_11] : memref<36x512xf32, #tpu.memory_space<vmem>>, vector<4x256xf32>
    tpu.vector_store %arg7[%c12, %c0_11], %20 {strides = array<i32>} : memref<36x512xf32, #tpu.memory_space<vmem>>, vector<4x256xf32>,
    %c16 = arith.constant 16 : index
    %c0_12 = arith.constant 0 : index
    %22 = vector.load %arg7[%c16, %c0_12] : memref<36x512xf32, #tpu.memory_space<vmem>>, vector<4x256xf32>
    tpu.vector_store %arg7[%c16, %c0_12], %1 {strides = array<i32>} : memref<36x512xf32, #tpu.memory_space<vmem>>, vector<4x256xf32>,
    %c255_i32 = arith.constant 255 : i32
    %23 = tpu.dynamic_rotate %1 by %c255_i32 dim 1 : vector<4x256xf32>, i32 -> vector<4x256xf32>
    %c5 = arith.constant 5 : index
    %c0_13 = arith.constant 0 : index
    %24 = vector.load %arg1[%c5, %c0_13] : memref<9x256xf32, #tpu.memory_space<vmem>>, vector<1x256xf32>
    %25 = vector.broadcast %24 : vector<1x256xf32> to vector<4x256xf32>
    %26 = arith.mulf %23, %25 : vector<4x256xf32>
    %c20 = arith.constant 20 : index
    %c0_14 = arith.constant 0 : index
    %27 = vector.load %arg7[%c20, %c0_14] : memref<36x512xf32, #tpu.memory_space<vmem>>, vector<4x256xf32>
    tpu.vector_store %arg7[%c20, %c0_14], %26 {strides = array<i32>} : memref<36x512xf32, #tpu.memory_space<vmem>>, vector<4x256xf32>,
    %c241_i32 = arith.constant 241 : i32
    %28 = tpu.dynamic_rotate %1 by %c241_i32 dim 1 : vector<4x256xf32>, i32 -> vector<4x256xf32>
    %c6 = arith.constant 6 : index
    %c0_15 = arith.constant 0 : index
    %29 = vector.load %arg1[%c6, %c0_15] : memref<9x256xf32, #tpu.memory_space<vmem>>, vector<1x256xf32>
    %30 = vector.broadcast %29 : vector<1x256xf32> to vector<4x256xf32>
    %31 = arith.mulf %28, %30 : vector<4x256xf32>
    %c24 = arith.constant 24 : index
    %c0_16 = arith.constant 0 : index
    %32 = vector.load %arg7[%c24, %c0_16] : memref<36x512xf32, #tpu.memory_space<vmem>>, vector<4x256xf32>
    tpu.vector_store %arg7[%c24, %c0_16], %31 {strides = array<i32>} : memref<36x512xf32, #tpu.memory_space<vmem>>, vector<4x256xf32>,
    %c240_i32 = arith.constant 240 : i32
    %33 = tpu.dynamic_rotate %1 by %c240_i32 dim 1 : vector<4x256xf32>, i32 -> vector<4x256xf32>
    %c7 = arith.constant 7 : index
    %c0_17 = arith.constant 0 : index
    %34 = vector.load %arg1[%c7, %c0_17] : memref<9x256xf32, #tpu.memory_space<vmem>>, vector<1x256xf32>
    %35 = vector.broadcast %34 : vector<1x256xf32> to vector<4x256xf32>
    %36 = arith.mulf %33, %35 : vector<4x256xf32>
    %c28 = arith.constant 28 : index
    %c0_18 = arith.constant 0 : index
    %37 = vector.load %arg7[%c28, %c0_18] : memref<36x512xf32, #tpu.memory_space<vmem>>, vector<4x256xf32>
    tpu.vector_store %arg7[%c28, %c0_18], %36 {strides = array<i32>} : memref<36x512xf32, #tpu.memory_space<vmem>>, vector<4x256xf32>,
    %c239_i32 = arith.constant 239 : i32
    %38 = tpu.dynamic_rotate %1 by %c239_i32 dim 1 : vector<4x256xf32>, i32 -> vector<4x256xf32>
    %c8_19 = arith.constant 8 : index
    %c0_20 = arith.constant 0 : index
    %39 = vector.load %arg1[%c8_19, %c0_20] : memref<9x256xf32, #tpu.memory_space<vmem>>, vector<1x256xf32>
    %40 = vector.broadcast %39 : vector<1x256xf32> to vector<4x256xf32>
    %41 = arith.mulf %38, %40 : vector<4x256xf32>
    %c32 = arith.constant 32 : index
    %c0_21 = arith.constant 0 : index
    %42 = vector.load %arg7[%c32, %c0_21] : memref<36x512xf32, #tpu.memory_space<vmem>>, vector<4x256xf32>
    tpu.vector_store %arg7[%c32, %c0_21], %41 {strides = array<i32>} : memref<36x512xf32, #tpu.memory_space<vmem>>, vector<4x256xf32>,
    %c1_22 = arith.constant 1 : index
    %c0_23 = arith.constant 0 : index
    %c0_24 = arith.constant 0 : index
    %43 = vector.load %arg0[%c1_22, %c0_23, %c0_24] : memref<2x4x256xf32, #tpu.memory_space<vmem>>, vector<1x4x256xf32>
    %44 = vector.shape_cast %43 : vector<1x4x256xf32> to vector<4x256xf32>
    %c17_i32_25 = arith.constant 17 : i32
    %45 = tpu.dynamic_rotate %44 by %c17_i32_25 dim 1 : vector<4x256xf32>, i32 -> vector<4x256xf32>
    %c0_26 = arith.constant 0 : index
    %c0_27 = arith.constant 0 : index
    %46 = vector.load %arg1[%c0_26, %c0_27] : memref<9x256xf32, #tpu.memory_space<vmem>>, vector<1x256xf32>
    %47 = vector.broadcast %46 : vector<1x256xf32> to vector<4x256xf32>
    %48 = arith.mulf %45, %47 : vector<4x256xf32>
    %c0_28 = arith.constant 0 : index
    %c256 = arith.constant 256 : index
    %49 = vector.load %arg7[%c0_28, %c256] : memref<36x512xf32, #tpu.memory_space<vmem>>, vector<4x256xf32>
    tpu.vector_store %arg7[%c0_28, %c256], %48 {strides = array<i32>} : memref<36x512xf32, #tpu.memory_space<vmem>>, vector<4x256xf32>,
    %c16_i32_29 = arith.constant 16 : i32
    %50 = tpu.dynamic_rotate %44 by %c16_i32_29 dim 1 : vector<4x256xf32>, i32 -> vector<4x256xf32>
    %c1_30 = arith.constant 1 : index
    %c0_31 = arith.constant 0 : index
    %51 = vector.load %arg1[%c1_30, %c0_31] : memref<9x256xf32, #tpu.memory_space<vmem>>, vector<1x256xf32>
    %52 = vector.broadcast %51 : vector<1x256xf32> to vector<4x256xf32>
    %53 = arith.mulf %50, %52 : vector<4x256xf32>
    %c4_32 = arith.constant 4 : index
    %c256_33 = arith.constant 256 : index
    %54 = vector.load %arg7[%c4_32, %c256_33] : memref<36x512xf32, #tpu.memory_space<vmem>>, vector<4x256xf32>
    tpu.vector_store %arg7[%c4_32, %c256_33], %53 {strides = array<i32>} : memref<36x512xf32, #tpu.memory_space<vmem>>, vector<4x256xf32>,
    %c15_i32_34 = arith.constant 15 : i32
    %55 = tpu.dynamic_rotate %44 by %c15_i32_34 dim 1 : vector<4x256xf32>, i32 -> vector<4x256xf32>
    %c2_35 = arith.constant 2 : index
    %c0_36 = arith.constant 0 : index
    %56 = vector.load %arg1[%c2_35, %c0_36] : memref<9x256xf32, #tpu.memory_space<vmem>>, vector<1x256xf32>
    %57 = vector.broadcast %56 : vector<1x256xf32> to vector<4x256xf32>
    %58 = arith.mulf %55, %57 : vector<4x256xf32>
    %c8_37 = arith.constant 8 : index
    %c256_38 = arith.constant 256 : index
    %59 = vector.load %arg7[%c8_37, %c256_38] : memref<36x512xf32, #tpu.memory_space<vmem>>, vector<4x256xf32>
    tpu.vector_store %arg7[%c8_37, %c256_38], %58 {strides = array<i32>} : memref<36x512xf32, #tpu.memory_space<vmem>>, vector<4x256xf32>,
    %c1_i32_39 = arith.constant 1 : i32
    %60 = tpu.dynamic_rotate %44 by %c1_i32_39 dim 1 : vector<4x256xf32>, i32 -> vector<4x256xf32>
    %c3_40 = arith.constant 3 : index
    %c0_41 = arith.constant 0 : index
    %61 = vector.load %arg1[%c3_40, %c0_41] : memref<9x256xf32, #tpu.memory_space<vmem>>, vector<1x256xf32>
    %62 = vector.broadcast %61 : vector<1x256xf32> to vector<4x256xf32>
    %63 = arith.mulf %60, %62 : vector<4x256xf32>
    %c12_42 = arith.constant 12 : index
    %c256_43 = arith.constant 256 : index
    %64 = vector.load %arg7[%c12_42, %c256_43] : memref<36x512xf32, #tpu.memory_space<vmem>>, vector<4x256xf32>
    tpu.vector_store %arg7[%c12_42, %c256_43], %63 {strides = array<i32>} : memref<36x512xf32, #tpu.memory_space<vmem>>, vector<4x256xf32>,
    %c16_44 = arith.constant 16 : index
    %c256_45 = arith.constant 256 : index
    %65 = vector.load %arg7[%c16_44, %c256_45] : memref<36x512xf32, #tpu.memory_space<vmem>>, vector<4x256xf32>
    tpu.vector_store %arg7[%c16_44, %c256_45], %44 {strides = array<i32>} : memref<36x512xf32, #tpu.memory_space<vmem>>, vector<4x256xf32>,
    %c255_i32_46 = arith.constant 255 : i32
    %66 = tpu.dynamic_rotate %44 by %c255_i32_46 dim 1 : vector<4x256xf32>, i32 -> vector<4x256xf32>
    %c5_47 = arith.constant 5 : index
    %c0_48 = arith.constant 0 : index
    %67 = vector.load %arg1[%c5_47, %c0_48] : memref<9x256xf32, #tpu.memory_space<vmem>>, vector<1x256xf32>
    %68 = vector.broadcast %67 : vector<1x256xf32> to vector<4x256xf32>
    %69 = arith.mulf %66, %68 : vector<4x256xf32>
    %c20_49 = arith.constant 20 : index
    %c256_50 = arith.constant 256 : index
    %70 = vector.load %arg7[%c20_49, %c256_50] : memref<36x512xf32, #tpu.memory_space<vmem>>, vector<4x256xf32>
    tpu.vector_store %arg7[%c20_49, %c256_50], %69 {strides = array<i32>} : memref<36x512xf32, #tpu.memory_space<vmem>>, vector<4x256xf32>,
    %c241_i32_51 = arith.constant 241 : i32
    %71 = tpu.dynamic_rotate %44 by %c241_i32_51 dim 1 : vector<4x256xf32>, i32 -> vector<4x256xf32>
    %c6_52 = arith.constant 6 : index
    %c0_53 = arith.constant 0 : index
    %72 = vector.load %arg1[%c6_52, %c0_53] : memref<9x256xf32, #tpu.memory_space<vmem>>, vector<1x256xf32>
    %73 = vector.broadcast %72 : vector<1x256xf32> to vector<4x256xf32>
    %74 = arith.mulf %71, %73 : vector<4x256xf32>
    %c24_54 = arith.constant 24 : index
    %c256_55 = arith.constant 256 : index
    %75 = vector.load %arg7[%c24_54, %c256_55] : memref<36x512xf32, #tpu.memory_space<vmem>>, vector<4x256xf32>
    tpu.vector_store %arg7[%c24_54, %c256_55], %74 {strides = array<i32>} : memref<36x512xf32, #tpu.memory_space<vmem>>, vector<4x256xf32>,
    %c240_i32_56 = arith.constant 240 : i32
    %76 = tpu.dynamic_rotate %44 by %c240_i32_56 dim 1 : vector<4x256xf32>, i32 -> vector<4x256xf32>
    %c7_57 = arith.constant 7 : index
    %c0_58 = arith.constant 0 : index
    %77 = vector.load %arg1[%c7_57, %c0_58] : memref<9x256xf32, #tpu.memory_space<vmem>>, vector<1x256xf32>
    %78 = vector.broadcast %77 : vector<1x256xf32> to vector<4x256xf32>
    %79 = arith.mulf %76, %78 : vector<4x256xf32>
    %c28_59 = arith.constant 28 : index
    %c256_60 = arith.constant 256 : index
    %80 = vector.load %arg7[%c28_59, %c256_60] : memref<36x512xf32, #tpu.memory_space<vmem>>, vector<4x256xf32>
    tpu.vector_store %arg7[%c28_59, %c256_60], %79 {strides = array<i32>} : memref<36x512xf32, #tpu.memory_space<vmem>>, vector<4x256xf32>,
    %c239_i32_61 = arith.constant 239 : i32
    %81 = tpu.dynamic_rotate %44 by %c239_i32_61 dim 1 : vector<4x256xf32>, i32 -> vector<4x256xf32>
    %c8_62 = arith.constant 8 : index
    %c0_63 = arith.constant 0 : index
    %82 = vector.load %arg1[%c8_62, %c0_63] : memref<9x256xf32, #tpu.memory_space<vmem>>, vector<1x256xf32>
    %83 = vector.broadcast %82 : vector<1x256xf32> to vector<4x256xf32>
    %84 = arith.mulf %81, %83 : vector<4x256xf32>
    %c32_64 = arith.constant 32 : index
    %c256_65 = arith.constant 256 : index
    %85 = vector.load %arg7[%c32_64, %c256_65] : memref<36x512xf32, #tpu.memory_space<vmem>>, vector<4x256xf32>
    tpu.vector_store %arg7[%c32_64, %c256_65], %84 {strides = array<i32>} : memref<36x512xf32, #tpu.memory_space<vmem>>, vector<4x256xf32>,
    %c0_66 = arith.constant 0 : index
    %c0_67 = arith.constant 0 : index
    %86 = vector.load %arg2[%c0_66, %c0_67] : memref<2x36xf32, #tpu.memory_space<vmem>>, vector<2x36xf32>
    %c0_68 = arith.constant 0 : index
    %c0_69 = arith.constant 0 : index
    %87 = vector.load %arg7[%c0_68, %c0_69] : memref<36x512xf32, #tpu.memory_space<vmem>>, vector<36x512xf32>
    %cst = arith.constant dense<0.000000e+00> : vector<2x512xf32>
    %88 = tpu.matmul %86, %87, %cst {dimension_numbers = #tpu.dot_dimension_numbers<[1], [0], [0], [1], [0, 0, 1, 1], [], []>} : vector<2x36xf32>, vector<36x512xf32>, vector<2x512xf32> -> vector<2x512xf32>
    %c0_70 = arith.constant 0 : index
    %c0_71 = arith.constant 0 : index
    %89 = vector.load %arg3[%c0_70, %c0_71] : memref<2x1xf32, #tpu.memory_space<vmem>>, vector<2x1xf32>
    %90 = vector.broadcast %89 : vector<2x1xf32> to vector<2x512xf32>
    %91 = arith.addf %88, %90 : vector<2x512xf32>
    %92 = arith.negf %91 : vector<2x512xf32>
    %93 = math.exp %92 : vector<2x512xf32>
    %cst_72 = arith.constant 1.000000e+00 : f32
    %94 = vector.broadcast %cst_72 : f32 to vector<2x512xf32>
    %95 = arith.addf %94, %93 : vector<2x512xf32>
    %96 = arith.divf %94, %95 : vector<2x512xf32>
    %97 = arith.mulf %91, %96 : vector<2x512xf32>
    %98 = vector.extract_strided_slice %97 {offsets = [0, 0], sizes = [2, 256], strides = [1, 1]} : vector<2x512xf32> to vector<2x256xf32>
    %c17_i32_73 = arith.constant 17 : i32
    %99 = tpu.dynamic_rotate %98 by %c17_i32_73 dim 1 : vector<2x256xf32>, i32 -> vector<2x256xf32>
    %c0_74 = arith.constant 0 : index
    %c0_75 = arith.constant 0 : index
    %100 = vector.load %arg1[%c0_74, %c0_75] : memref<9x256xf32, #tpu.memory_space<vmem>>, vector<1x256xf32>
    %101 = vector.broadcast %100 : vector<1x256xf32> to vector<2x256xf32>
    %102 = arith.mulf %99, %101 : vector<2x256xf32>
    %c0_76 = arith.constant 0 : index
    %c0_77 = arith.constant 0 : index
    %103 = vector.load %arg8[%c0_76, %c0_77] : memref<18x512xf32, #tpu.memory_space<vmem>>, vector<2x256xf32>
    tpu.vector_store %arg8[%c0_76, %c0_77], %102 {strides = array<i32>} : memref<18x512xf32, #tpu.memory_space<vmem>>, vector<2x256xf32>,
    %c16_i32_78 = arith.constant 16 : i32
    %104 = tpu.dynamic_rotate %98 by %c16_i32_78 dim 1 : vector<2x256xf32>, i32 -> vector<2x256xf32>
    %c1_79 = arith.constant 1 : index
    %c0_80 = arith.constant 0 : index
    %105 = vector.load %arg1[%c1_79, %c0_80] : memref<9x256xf32, #tpu.memory_space<vmem>>, vector<1x256xf32>
    %106 = vector.broadcast %105 : vector<1x256xf32> to vector<2x256xf32>
    %107 = arith.mulf %104, %106 : vector<2x256xf32>
    %c2_81 = arith.constant 2 : index
    %c0_82 = arith.constant 0 : index
    %108 = vector.load %arg8[%c2_81, %c0_82] : memref<18x512xf32, #tpu.memory_space<vmem>>, vector<2x256xf32>
    tpu.vector_store %arg8[%c2_81, %c0_82], %107 {strides = array<i32>} : memref<18x512xf32, #tpu.memory_space<vmem>>, vector<2x256xf32>,
    %c15_i32_83 = arith.constant 15 : i32
    %109 = tpu.dynamic_rotate %98 by %c15_i32_83 dim 1 : vector<2x256xf32>, i32 -> vector<2x256xf32>
    %c2_84 = arith.constant 2 : index
    %c0_85 = arith.constant 0 : index
    %110 = vector.load %arg1[%c2_84, %c0_85] : memref<9x256xf32, #tpu.memory_space<vmem>>, vector<1x256xf32>
    %111 = vector.broadcast %110 : vector<1x256xf32> to vector<2x256xf32>
    %112 = arith.mulf %109, %111 : vector<2x256xf32>
    %c4_86 = arith.constant 4 : index
    %c0_87 = arith.constant 0 : index
    %113 = vector.load %arg8[%c4_86, %c0_87] : memref<18x512xf32, #tpu.memory_space<vmem>>, vector<2x256xf32>
    tpu.vector_store %arg8[%c4_86, %c0_87], %112 {strides = array<i32>} : memref<18x512xf32, #tpu.memory_space<vmem>>, vector<2x256xf32>,
    %c1_i32_88 = arith.constant 1 : i32
    %114 = tpu.dynamic_rotate %98 by %c1_i32_88 dim 1 : vector<2x256xf32>, i32 -> vector<2x256xf32>
    %c3_89 = arith.constant 3 : index
    %c0_90 = arith.constant 0 : index
    %115 = vector.load %arg1[%c3_89, %c0_90] : memref<9x256xf32, #tpu.memory_space<vmem>>, vector<1x256xf32>
    %116 = vector.broadcast %115 : vector<1x256xf32> to vector<2x256xf32>
    %117 = arith.mulf %114, %116 : vector<2x256xf32>
    %c6_91 = arith.constant 6 : index
    %c0_92 = arith.constant 0 : index
    %118 = vector.load %arg8[%c6_91, %c0_92] : memref<18x512xf32, #tpu.memory_space<vmem>>, vector<2x256xf32>
    tpu.vector_store %arg8[%c6_91, %c0_92], %117 {strides = array<i32>} : memref<18x512xf32, #tpu.memory_space<vmem>>, vector<2x256xf32>,
    %c8_93 = arith.constant 8 : index
    %c0_94 = arith.constant 0 : index
    %119 = vector.load %arg8[%c8_93, %c0_94] : memref<18x512xf32, #tpu.memory_space<vmem>>, vector<2x256xf32>
    tpu.vector_store %arg8[%c8_93, %c0_94], %98 {strides = array<i32>} : memref<18x512xf32, #tpu.memory_space<vmem>>, vector<2x256xf32>,
    %c255_i32_95 = arith.constant 255 : i32
    %120 = tpu.dynamic_rotate %98 by %c255_i32_95 dim 1 : vector<2x256xf32>, i32 -> vector<2x256xf32>
    %c5_96 = arith.constant 5 : index
    %c0_97 = arith.constant 0 : index
    %121 = vector.load %arg1[%c5_96, %c0_97] : memref<9x256xf32, #tpu.memory_space<vmem>>, vector<1x256xf32>
    %122 = vector.broadcast %121 : vector<1x256xf32> to vector<2x256xf32>
    %123 = arith.mulf %120, %122 : vector<2x256xf32>
    %c10 = arith.constant 10 : index
    %c0_98 = arith.constant 0 : index
    %124 = vector.load %arg8[%c10, %c0_98] : memref<18x512xf32, #tpu.memory_space<vmem>>, vector<2x256xf32>
    tpu.vector_store %arg8[%c10, %c0_98], %123 {strides = array<i32>} : memref<18x512xf32, #tpu.memory_space<vmem>>, vector<2x256xf32>,
    %c241_i32_99 = arith.constant 241 : i32
    %125 = tpu.dynamic_rotate %98 by %c241_i32_99 dim 1 : vector<2x256xf32>, i32 -> vector<2x256xf32>
    %c6_100 = arith.constant 6 : index
    %c0_101 = arith.constant 0 : index
    %126 = vector.load %arg1[%c6_100, %c0_101] : memref<9x256xf32, #tpu.memory_space<vmem>>, vector<1x256xf32>
    %127 = vector.broadcast %126 : vector<1x256xf32> to vector<2x256xf32>
    %128 = arith.mulf %125, %127 : vector<2x256xf32>
    %c12_102 = arith.constant 12 : index
    %c0_103 = arith.constant 0 : index
    %129 = vector.load %arg8[%c12_102, %c0_103] : memref<18x512xf32, #tpu.memory_space<vmem>>, vector<2x256xf32>
    tpu.vector_store %arg8[%c12_102, %c0_103], %128 {strides = array<i32>} : memref<18x512xf32, #tpu.memory_space<vmem>>, vector<2x256xf32>,
    %c240_i32_104 = arith.constant 240 : i32
    %130 = tpu.dynamic_rotate %98 by %c240_i32_104 dim 1 : vector<2x256xf32>, i32 -> vector<2x256xf32>
    %c7_105 = arith.constant 7 : index
    %c0_106 = arith.constant 0 : index
    %131 = vector.load %arg1[%c7_105, %c0_106] : memref<9x256xf32, #tpu.memory_space<vmem>>, vector<1x256xf32>
    %132 = vector.broadcast %131 : vector<1x256xf32> to vector<2x256xf32>
    %133 = arith.mulf %130, %132 : vector<2x256xf32>
    %c14 = arith.constant 14 : index
    %c0_107 = arith.constant 0 : index
    %134 = vector.load %arg8[%c14, %c0_107] : memref<18x512xf32, #tpu.memory_space<vmem>>, vector<2x256xf32>
    tpu.vector_store %arg8[%c14, %c0_107], %133 {strides = array<i32>} : memref<18x512xf32, #tpu.memory_space<vmem>>, vector<2x256xf32>,
    %c239_i32_108 = arith.constant 239 : i32
    %135 = tpu.dynamic_rotate %98 by %c239_i32_108 dim 1 : vector<2x256xf32>, i32 -> vector<2x256xf32>
    %c8_109 = arith.constant 8 : index
    %c0_110 = arith.constant 0 : index
    %136 = vector.load %arg1[%c8_109, %c0_110] : memref<9x256xf32, #tpu.memory_space<vmem>>, vector<1x256xf32>
    %137 = vector.broadcast %136 : vector<1x256xf32> to vector<2x256xf32>
    %138 = arith.mulf %135, %137 : vector<2x256xf32>
    %c16_111 = arith.constant 16 : index
    %c0_112 = arith.constant 0 : index
    %139 = vector.load %arg8[%c16_111, %c0_112] : memref<18x512xf32, #tpu.memory_space<vmem>>, vector<2x256xf32>
    tpu.vector_store %arg8[%c16_111, %c0_112], %138 {strides = array<i32>} : memref<18x512xf32, #tpu.memory_space<vmem>>, vector<2x256xf32>,
    %140 = vector.extract_strided_slice %97 {offsets = [0, 256], sizes = [2, 256], strides = [1, 1]} : vector<2x512xf32> to vector<2x256xf32>
    %c17_i32_113 = arith.constant 17 : i32
    %141 = tpu.dynamic_rotate %140 by %c17_i32_113 dim 1 : vector<2x256xf32>, i32 -> vector<2x256xf32>
    %c0_114 = arith.constant 0 : index
    %c0_115 = arith.constant 0 : index
    %142 = vector.load %arg1[%c0_114, %c0_115] : memref<9x256xf32, #tpu.memory_space<vmem>>, vector<1x256xf32>
    %143 = vector.broadcast %142 : vector<1x256xf32> to vector<2x256xf32>
    %144 = arith.mulf %141, %143 : vector<2x256xf32>
    %c0_116 = arith.constant 0 : index
    %c256_117 = arith.constant 256 : index
    %145 = vector.load %arg8[%c0_116, %c256_117] : memref<18x512xf32, #tpu.memory_space<vmem>>, vector<2x256xf32>
    tpu.vector_store %arg8[%c0_116, %c256_117], %144 {strides = array<i32>} : memref<18x512xf32, #tpu.memory_space<vmem>>, vector<2x256xf32>,
    %c16_i32_118 = arith.constant 16 : i32
    %146 = tpu.dynamic_rotate %140 by %c16_i32_118 dim 1 : vector<2x256xf32>, i32 -> vector<2x256xf32>
    %c1_119 = arith.constant 1 : index
    %c0_120 = arith.constant 0 : index
    %147 = vector.load %arg1[%c1_119, %c0_120] : memref<9x256xf32, #tpu.memory_space<vmem>>, vector<1x256xf32>
    %148 = vector.broadcast %147 : vector<1x256xf32> to vector<2x256xf32>
    %149 = arith.mulf %146, %148 : vector<2x256xf32>
    %c2_121 = arith.constant 2 : index
    %c256_122 = arith.constant 256 : index
    %150 = vector.load %arg8[%c2_121, %c256_122] : memref<18x512xf32, #tpu.memory_space<vmem>>, vector<2x256xf32>
    tpu.vector_store %arg8[%c2_121, %c256_122], %149 {strides = array<i32>} : memref<18x512xf32, #tpu.memory_space<vmem>>, vector<2x256xf32>,
    %c15_i32_123 = arith.constant 15 : i32
    %151 = tpu.dynamic_rotate %140 by %c15_i32_123 dim 1 : vector<2x256xf32>, i32 -> vector<2x256xf32>
    %c2_124 = arith.constant 2 : index
    %c0_125 = arith.constant 0 : index
    %152 = vector.load %arg1[%c2_124, %c0_125] : memref<9x256xf32, #tpu.memory_space<vmem>>, vector<1x256xf32>
    %153 = vector.broadcast %152 : vector<1x256xf32> to vector<2x256xf32>
    %154 = arith.mulf %151, %153 : vector<2x256xf32>
    %c4_126 = arith.constant 4 : index
    %c256_127 = arith.constant 256 : index
    %155 = vector.load %arg8[%c4_126, %c256_127] : memref<18x512xf32, #tpu.memory_space<vmem>>, vector<2x256xf32>
    tpu.vector_store %arg8[%c4_126, %c256_127], %154 {strides = array<i32>} : memref<18x512xf32, #tpu.memory_space<vmem>>, vector<2x256xf32>,
    %c1_i32_128 = arith.constant 1 : i32
    %156 = tpu.dynamic_rotate %140 by %c1_i32_128 dim 1 : vector<2x256xf32>, i32 -> vector<2x256xf32>
    %c3_129 = arith.constant 3 : index
    %c0_130 = arith.constant 0 : index
    %157 = vector.load %arg1[%c3_129, %c0_130] : memref<9x256xf32, #tpu.memory_space<vmem>>, vector<1x256xf32>
    %158 = vector.broadcast %157 : vector<1x256xf32> to vector<2x256xf32>
    %159 = arith.mulf %156, %158 : vector<2x256xf32>
    %c6_131 = arith.constant 6 : index
    %c256_132 = arith.constant 256 : index
    %160 = vector.load %arg8[%c6_131, %c256_132] : memref<18x512xf32, #tpu.memory_space<vmem>>, vector<2x256xf32>
    tpu.vector_store %arg8[%c6_131, %c256_132], %159 {strides = array<i32>} : memref<18x512xf32, #tpu.memory_space<vmem>>, vector<2x256xf32>,
    %c8_133 = arith.constant 8 : index
    %c256_134 = arith.constant 256 : index
    %161 = vector.load %arg8[%c8_133, %c256_134] : memref<18x512xf32, #tpu.memory_space<vmem>>, vector<2x256xf32>
    tpu.vector_store %arg8[%c8_133, %c256_134], %140 {strides = array<i32>} : memref<18x512xf32, #tpu.memory_space<vmem>>, vector<2x256xf32>,
    %c255_i32_135 = arith.constant 255 : i32
    %162 = tpu.dynamic_rotate %140 by %c255_i32_135 dim 1 : vector<2x256xf32>, i32 -> vector<2x256xf32>
    %c5_136 = arith.constant 5 : index
    %c0_137 = arith.constant 0 : index
    %163 = vector.load %arg1[%c5_136, %c0_137] : memref<9x256xf32, #tpu.memory_space<vmem>>, vector<1x256xf32>
    %164 = vector.broadcast %163 : vector<1x256xf32> to vector<2x256xf32>
    %165 = arith.mulf %162, %164 : vector<2x256xf32>
    %c10_138 = arith.constant 10 : index
    %c256_139 = arith.constant 256 : index
    %166 = vector.load %arg8[%c10_138, %c256_139] : memref<18x512xf32, #tpu.memory_space<vmem>>, vector<2x256xf32>
    tpu.vector_store %arg8[%c10_138, %c256_139], %165 {strides = array<i32>} : memref<18x512xf32, #tpu.memory_space<vmem>>, vector<2x256xf32>,
    %c241_i32_140 = arith.constant 241 : i32
    %167 = tpu.dynamic_rotate %140 by %c241_i32_140 dim 1 : vector<2x256xf32>, i32 -> vector<2x256xf32>
    %c6_141 = arith.constant 6 : index
    %c0_142 = arith.constant 0 : index
    %168 = vector.load %arg1[%c6_141, %c0_142] : memref<9x256xf32, #tpu.memory_space<vmem>>, vector<1x256xf32>
    %169 = vector.broadcast %168 : vector<1x256xf32> to vector<2x256xf32>
    %170 = arith.mulf %167, %169 : vector<2x256xf32>
    %c12_143 = arith.constant 12 : index
    %c256_144 = arith.constant 256 : index
    %171 = vector.load %arg8[%c12_143, %c256_144] : memref<18x512xf32, #tpu.memory_space<vmem>>, vector<2x256xf32>
    tpu.vector_store %arg8[%c12_143, %c256_144], %170 {strides = array<i32>} : memref<18x512xf32, #tpu.memory_space<vmem>>, vector<2x256xf32>,
    %c240_i32_145 = arith.constant 240 : i32
    %172 = tpu.dynamic_rotate %140 by %c240_i32_145 dim 1 : vector<2x256xf32>, i32 -> vector<2x256xf32>
    %c7_146 = arith.constant 7 : index
    %c0_147 = arith.constant 0 : index
    %173 = vector.load %arg1[%c7_146, %c0_147] : memref<9x256xf32, #tpu.memory_space<vmem>>, vector<1x256xf32>
    %174 = vector.broadcast %173 : vector<1x256xf32> to vector<2x256xf32>
    %175 = arith.mulf %172, %174 : vector<2x256xf32>
    %c14_148 = arith.constant 14 : index
    %c256_149 = arith.constant 256 : index
    %176 = vector.load %arg8[%c14_148, %c256_149] : memref<18x512xf32, #tpu.memory_space<vmem>>, vector<2x256xf32>
    tpu.vector_store %arg8[%c14_148, %c256_149], %175 {strides = array<i32>} : memref<18x512xf32, #tpu.memory_space<vmem>>, vector<2x256xf32>,
    %c239_i32_150 = arith.constant 239 : i32
    %177 = tpu.dynamic_rotate %140 by %c239_i32_150 dim 1 : vector<2x256xf32>, i32 -> vector<2x256xf32>
    %c8_151 = arith.constant 8 : index
    %c0_152 = arith.constant 0 : index
    %178 = vector.load %arg1[%c8_151, %c0_152] : memref<9x256xf32, #tpu.memory_space<vmem>>, vector<1x256xf32>
    %179 = vector.broadcast %178 : vector<1x256xf32> to vector<2x256xf32>
    %180 = arith.mulf %177, %179 : vector<2x256xf32>
    %c16_153 = arith.constant 16 : index
    %c256_154 = arith.constant 256 : index
    %181 = vector.load %arg8[%c16_153, %c256_154] : memref<18x512xf32, #tpu.memory_space<vmem>>, vector<2x256xf32>
    tpu.vector_store %arg8[%c16_153, %c256_154], %180 {strides = array<i32>} : memref<18x512xf32, #tpu.memory_space<vmem>>, vector<2x256xf32>,
    %c0_155 = arith.constant 0 : index
    %c0_156 = arith.constant 0 : index
    %182 = vector.load %arg4[%c0_155, %c0_156] : memref<4x18xf32, #tpu.memory_space<vmem>>, vector<4x18xf32>
    %c0_157 = arith.constant 0 : index
    %c0_158 = arith.constant 0 : index
    %183 = vector.load %arg8[%c0_157, %c0_158] : memref<18x512xf32, #tpu.memory_space<vmem>>, vector<18x512xf32>
    %cst_159 = arith.constant dense<0.000000e+00> : vector<4x512xf32>
    %184 = tpu.matmul %182, %183, %cst_159 {dimension_numbers = #tpu.dot_dimension_numbers<[1], [0], [0], [1], [0, 0, 1, 1], [], []>} : vector<4x18xf32>, vector<18x512xf32>, vector<4x512xf32> -> vector<4x512xf32>
    %c0_160 = arith.constant 0 : index
    %c0_161 = arith.constant 0 : index
    %185 = vector.load %arg5[%c0_160, %c0_161] : memref<4x1xf32, #tpu.memory_space<vmem>>, vector<4x1xf32>
    %186 = vector.broadcast %185 : vector<4x1xf32> to vector<4x512xf32>
    %187 = arith.addf %184, %186 : vector<4x512xf32>
    %188 = arith.negf %187 : vector<4x512xf32>
    %189 = math.exp %188 : vector<4x512xf32>
    %cst_162 = arith.constant 1.000000e+00 : f32
    %190 = vector.broadcast %cst_162 : f32 to vector<4x512xf32>
    %191 = arith.addf %190, %189 : vector<4x512xf32>
    %192 = arith.divf %190, %191 : vector<4x512xf32>
    %193 = arith.mulf %187, %192 : vector<4x512xf32>
    %194 = vector.extract_strided_slice %193 {offsets = [0, 0], sizes = [4, 256], strides = [1, 1]} : vector<4x512xf32> to vector<4x256xf32>
    %c0_163 = arith.constant 0 : index
    %c0_164 = arith.constant 0 : index
    %c0_165 = arith.constant 0 : index
    %195 = vector.load %arg0[%c0_163, %c0_164, %c0_165] : memref<2x4x256xf32, #tpu.memory_space<vmem>>, vector<1x4x256xf32>
    %196 = vector.shape_cast %195 : vector<1x4x256xf32> to vector<4x256xf32>
    %197 = arith.addf %194, %196 : vector<4x256xf32>
    %c0_166 = arith.constant 0 : index
    %c0_167 = arith.constant 0 : index
    %c0_168 = arith.constant 0 : index
    %198 = vector.load %arg6[%c0_166, %c0_167, %c0_168] : memref<2x4x256xf32, #tpu.memory_space<vmem>>, vector<1x4x256xf32>
    %199 = vector.shape_cast %198 : vector<1x4x256xf32> to vector<4x256xf32>
    %200 = vector.shape_cast %197 : vector<4x256xf32> to vector<1x4x256xf32>
    tpu.vector_store %arg6[%c0_166, %c0_167, %c0_168], %200 {strides = array<i32>} : memref<2x4x256xf32, #tpu.memory_space<vmem>>, vector<1x4x256xf32>,
    %201 = vector.extract_strided_slice %193 {offsets = [0, 256], sizes = [4, 256], strides = [1, 1]} : vector<4x512xf32> to vector<4x256xf32>
    %c1_169 = arith.constant 1 : index
    %c0_170 = arith.constant 0 : index
    %c0_171 = arith.constant 0 : index
    %202 = vector.load %arg0[%c1_169, %c0_170, %c0_171] : memref<2x4x256xf32, #tpu.memory_space<vmem>>, vector<1x4x256xf32>
    %203 = vector.shape_cast %202 : vector<1x4x256xf32> to vector<4x256xf32>
    %204 = arith.addf %201, %203 : vector<4x256xf32>
    %c1_172 = arith.constant 1 : index
    %c0_173 = arith.constant 0 : index
    %c0_174 = arith.constant 0 : index
    %205 = vector.load %arg6[%c1_172, %c0_173, %c0_174] : memref<2x4x256xf32, #tpu.memory_space<vmem>>, vector<1x4x256xf32>
    %206 = vector.shape_cast %205 : vector<1x4x256xf32> to vector<4x256xf32>
    %207 = vector.shape_cast %204 : vector<4x256xf32> to vector<1x4x256xf32>
    tpu.vector_store %arg6[%c1_172, %c0_173, %c0_174], %207 {strides = array<i32>} : memref<2x4x256xf32, #tpu.memory_space<vmem>>, vector<1x4x256xf32>,
    return
  }
}

</mosaic_0001>

<bundles_post_ra>
// kernel: tpu_custom_call.1
= control target key start
LH: loop header
LB: loop body
LE: loop exit
PB: predicated region body
PF: predicated region fallthrough
CT: control target
= control target key end

     0   :  { %11 = vsyncpa [#allocation5], 0  ;;  %s1920_s0 = inlined_call_operand.hbm [shape: f32[2,4,256], index: 0, kind: input, shape index: {}]   ;;  %s1921_s1 = inlined_call_operand.hbm [shape: f32[9,256], index: 1, kind: input, shape index: {}]   ;;  %s1922_s2 = inlined_call_operand.vmem [shape: f32[2,36], index: 2, kind: input, shape index: {}]   ;;  %s1923_s3 = inlined_call_operand.vmem [shape: f32[2,1], index: 3, kind: input, shape index: {}]   ;;  %s1924_s4 = inlined_call_operand.vmem [shape: f32[4,18], index: 4, kind: input, shape index: {}]   ;;  %s1925_s5 = inlined_call_operand.vmem [shape: f32[4,1], index: 5, kind: input, shape index: {}]   ;;  %s1926_s6 = inlined_call_operand.hbm [shape: f32[2,4,256], index: 6, kind: output, shape index: {}]  }
   0x1   :  { %12 = vsyncpa [#allocation8], 0 }
   0x2   :  { %13 = vsyncpa [#allocation6], 0  ;;  %s1540_s21 = smov [#allocation4]   ;;  %s1468_s25 = scalar_lea.hbm %s1920_s0, 256 }
   0x3   :  { %s19_s22 = sshll.u32 %s1540_s21, 4  ;;  %p1469_p0 = scmp.ne.s32.totalorder %s1920_s0, %s1468_s25  ;;  %s20_s22 = int_to_ptr.vmem [resolvable:$true] %s19_s22 }
   0x4   :  { %p1472_p1 = scmp.lt.u32.totalorder %s1468_s25, %s1920_s0 }
   0x6   :  { %p1474_p2 = pnand %p1472_p1, %p1469_p0 }
   0x8   :  { %1477 = shalt.err (!%p1474_p2)
}
   0x9   :  { %s1478_s30 = scalar_lea.vmem %s20_s22, 256  ;;  %p1483_p4 = scmp.lt.s32.totalorder %s20_s22, %s20_s22 }
   0xa   :  { %p1479_p3 = scmp.ne.s32.totalorder %s20_s22, %s1478_s30  ;;  %p1484_p5 = scmp.lt.s32.totalorder %s1478_s30, %s1478_s30 }
   0xc   :  { %p1485_p6 = por %p1484_p5, %p1483_p4 }
   0xe   :  { %p1486_p7 = pnand %p1485_p6, %p1479_p3 }
  0x10   :  { %1489 = shalt.err (!%p1486_p7)
}
  0x11   :  { %s1541_s7 = smov 128   ;;  %s1542_s8 = smov 8  }
  0x12   :  { %25 = dma.hbm_to_vmem [thread:$0]  %s1920_s0, 256, %s20_s22, [#allocation5], %s1541_s7, %s1541_s7, %s1542_s8  }
  0x13   :  { %s1543_s11 = smov [#allocation7]   ;;  %s1490_s15 = scalar_lea.hbm %s1921_s1, 512 }
  0x14   :  { %s31_s12 = sshll.u32 %s1543_s11, 4  ;;  %p1491_p8 = scmp.ne.s32.totalorder %s1921_s1, %s1490_s15  ;;  %s32_s12 = int_to_ptr.vmem [resolvable:$true] %s31_s12 }
  0x15   :  { %p1494_p9 = scmp.lt.u32.totalorder %s1490_s15, %s1921_s1 }
  0x17   :  { %p1496_p10 = pnand %p1494_p9, %p1491_p8 }
  0x19   :  { %1499 = shalt.err (!%p1496_p10)
}
  0x1a   :  { %s1500_s20 = scalar_lea.vmem %s32_s12, 512  ;;  %p1505_p12 = scmp.lt.s32.totalorder %s32_s12, %s32_s12 }
  0x1b   :  { %p1501_p11 = scmp.ne.s32.totalorder %s32_s12, %s1500_s20  ;;  %p1506_p13 = scmp.lt.s32.totalorder %s1500_s20, %s1500_s20 }
  0x1d   :  { %p1507_p0 = por %p1506_p13, %p1505_p12 }
  0x1f   :  { %p1508_p1 = pnand %p1507_p0, %p1501_p11 }
  0x21   :  { %1511 = shalt.err (!%p1508_p1)
}
  0x22   :  { %s1544_s0 = smov 256   ;;  %s1545_s21 = smov 16  }
  0x23   :  { %37 = dma.hbm_to_vmem [thread:$0]  %s1921_s1, 512, %s32_s12, [#allocation8], %s1544_s0, %s1544_s0, %s1545_s21  }
  0x24   :  { %1534 = dma.done.wait [#allocation5], 256  }
  0x25   :  { %1535 = vsyncadd [#allocation5], 4294967040 }
  0x26   :  { %1536 = dma.done.wait [#allocation8], 512  }
  0x27   :  { %1537 = vsyncadd [#allocation8], 4294966784  ;;  %v52_v0 = vld [vmem:[#allocation4] sm:$0xff]  ;;  %v276_v1 = vld [vmem:[#allocation4 + $0x8] sm:$0xff]  ;;  %s1546_s24 = smov 1   ;;  %s1547_s1 = smov 17   ;;  %v60_v7 = vlaneseq }
  0x28   :  { %135 = vrot.lane.b32.xlu1 %v52_v0, %s1546_s24  ;;  %165 = vst [vmem:[#allocation2 + $0x40] sm:$0xf] %v52_v0  ;;  %81 = vrot.lane.b32.xlu0 %v52_v0, %s1545_s21  ;;  %380 = vst [vmem:[#allocation2 + $0x50] sm:$0xf] %v276_v1  ;;  %v54_v2 = vcombine.high %v52_v0, %v52_v0  ;;  %v278_v3 = vcombine.high %v276_v1, %v276_v1  ;;  %s1548_s25 = smov 15   ;;  %s1549_s26 = smov 127  }
  0x29   :  { %s1550_s27 = smov 112   ;;  %s1551_s28 = smov 113   ;;  %v1552_v4 = vmov 0.0   ;;  %v1554_v5 = vmov 0   ;;  %v503_v6 = vld [vmem:[%s1923_s3] sm:$0x3] }
  0x2a   :  { %166 = vst [vmem:[#allocation2 + $0x48] sm:$0xf] %v54_v2  ;;  %381 = vst [vmem:[#allocation2 + $0x58] sm:$0xf] %v278_v3  ;;  %590 = vmatprep.mubr.f32.mxu0 %v1552_v4  ;;  %661 = vmatprep.mubr.f32.mxu1 %v1552_v4  ;;  %s1553_s29 = smov 111   ;;  %v68_v8 = vshrl.u32 %v60_v7, 7 }
  0x2b   :  { %1431 = vset.pattern.permute.xlu0 %v1554_v5  ;;  %v1656_v9 = vand.u32 127, %v60_v7  ;;  %v143_v12 = vld [vmem:[#allocation7 + $0x3] ss:$8 sm:$0x3]  ;;  %vm513_vm8 = vcmask 1043456   ;;  %vm509_vm9 = vcmask 293888  }
  0x2c   :  { %302 = vrot.lane.b32.xlu0 %v276_v1, %s1545_s21  ;;  %137 = vrot.lane.b32.xlu1 %v54_v2, %s1546_s24  ;;  %v1658_v10 = vsub.s32 0, %v68_v8  ;;  %v1660_v11 = vsub.s32 1, %v68_v8  ;;  %v308_v17 = vld [vmem:[#allocation7 + $0x1] ss:$8 sm:$0x3]  ;;  %vm1147_vm10 = vcmask 1041408  }
  0x2d   :  { %vm139_vm0 = vcmp.lt.s32.totalorder %v1656_v9, 1  ;;  %v89_v18 = vld [vmem:[#allocation7 + $0x1] ss:$8 sm:$0x3]  ;;  %vm85_vm1 = vcmp.lt.s32.totalorder %v1656_v9, 16  ;;  %vm62_vm2 = vcmp.lt.s32.totalorder %v1656_v9, 17 }
  0x2e   :  { %v148_v15 = vrot.slane %v143_v12, %v1658_v10  ;;  %v152_v16 = vrot.slane %v143_v12, %v1660_v11  ;;  %v313_v23 = vrot.slane %v308_v17, %v1658_v10  ;;  %v317_v24 = vrot.slane %v308_v17, %v1660_v11  ;;  %v358_v25 = vld [vmem:[#allocation7 + $0x3] ss:$8 sm:$0x3]  ;;  %v65_v44 = vld [vmem:[#allocation7] ss:$8 sm:$0x3] }
  0x2f   :  { %v94_v28 = vrot.slane %v89_v18, %v1658_v10  ;;  %v98_v29 = vrot.slane %v89_v18, %v1660_v11  ;;  %v363_v34 = vrot.slane %v358_v25, %v1658_v10  ;;  %v367_v35 = vrot.slane %v358_v25, %v1660_v11  ;;  %v119_v57 = vld [vmem:[#allocation7 + $0x2] ss:$8 sm:$0x3]  ;;  %v286_v5 = vld [vmem:[#allocation7] ss:$8 sm:$0x3] }
  0x30   :  { %304 = vrot.lane.b32.xlu1 %v278_v3, %s1545_s21  ;;  %83 = vrot.lane.b32.xlu0 %v54_v2, %s1545_s21  ;;  %v70_v55 = vrot.slane %v65_v44, %v1658_v10  ;;  %v74_v56 = vrot.slane %v65_v44, %v1660_v11  ;;  %vm115_vm3 = vcmp.lt.s32.totalorder %v1656_v9, 15  ;;  %v336_v17 = vld [vmem:[#allocation7 + $0x2] ss:$8 sm:$0x3]  ;;  %vm171_vm4 = vcmp.lt.s32.totalorder %v1656_v9, 127 }
  0x31   :  { %v345_v25 = vrot.slane %v336_v17, %v1660_v11  ;;  %vm225_vm5 = vcmp.lt.s32.totalorder %v1656_v9, 112  ;;  %vm201_vm6 = vcmp.lt.s32.totalorder %v1656_v9, 113  ;;  %vm255_vm7 = vcmp.lt.s32.totalorder %v1656_v9, 111 }
  0x32   :  { %vm1143_vm11 = vcmask 146432  }
  0x34   :  { %354 = vrot.lane.b32.xlu1 %v278_v3, %s1546_s24  ;;  %352 = vrot.lane.b32.xlu0 %v276_v1, %s1546_s24 }
  0x38   :  { %58 = vrot.lane.b32.xlu1 %v54_v2, %s1547_s1  ;;  %56 = vrot.lane.b32.xlu0 %v52_v0, %s1547_s1 }
  0x3c   :  { %113 = vrot.lane.b32.xlu1 %v54_v2, %s1548_s25  ;;  %111 = vrot.lane.b32.xlu0 %v52_v0, %s1548_s25 }
  0x40   :  { %282 = vrot.lane.b32.xlu1 %v278_v3, %s1547_s1  ;;  %280 = vrot.lane.b32.xlu0 %v276_v1, %s1547_s1 }
  0x44   :  { %332 = vrot.lane.b32.xlu1 %v278_v3, %s1548_s25  ;;  %330 = vrot.lane.b32.xlu0 %v276_v1, %s1548_s25 }
  0x48   :  { %169 = vrot.lane.b32.xlu1 %v54_v2, %s1549_s26  ;;  %167 = vrot.lane.b32.xlu0 %v52_v0, %s1549_s26 }
  0x4c   :  { %223 = vrot.lane.b32.xlu1 %v54_v2, %s1550_s27  ;;  %221 = vrot.lane.b32.xlu0 %v52_v0, %s1550_s27 }
  0x50   :  { %384 = vrot.lane.b32.xlu1 %v278_v3, %s1549_s26  ;;  %382 = vrot.lane.b32.xlu0 %v276_v1, %s1549_s26 }
  0x54   :  { %434 = vrot.lane.b32.xlu1 %v278_v3, %s1550_s27  ;;  %432 = vrot.lane.b32.xlu0 %v276_v1, %s1550_s27 }
  0x58   :  { %199 = vrot.lane.b32.xlu1 %v54_v2, %s1551_s28  ;;  %197 = vrot.lane.b32.xlu0 %v52_v0, %s1551_s28 }
  0x5c   :  { %412 = vrot.lane.b32.xlu1 %v278_v3, %s1551_s28  ;;  %410 = vrot.lane.b32.xlu0 %v276_v1, %s1551_s28 }
  0x60   :  { %253 = vrot.lane.b32.xlu1 %v54_v2, %s1553_s29  ;;  %251 = vrot.lane.b32.xlu0 %v52_v0, %s1553_s29  ;;  %v124_v2 = vrot.slane %v119_v57, %v1658_v10 }
  0x64   :  { %462 = vrot.lane.b32.xlu1 %v278_v3, %s1553_s29  ;;  %460 = vrot.lane.b32.xlu0 %v276_v1, %s1553_s29  ;;  %v128_v3 = vrot.slane %v119_v57, %v1660_v11 }
  0x68   :  { %506 = vperm.xlu0 %1431, %v503_v6  }
  0x9a   :  { %v136_v13 = vpop.permute.xlu1 %135  ;;  %v82_v14 = vpop.permute.xlu0 %81 }
  0x9e   :  { %v303_v19 = vpop.permute.xlu0 %302  ;;  %v138_v20 = vpop.permute.xlu1 %137 }
  0x9f   :  { %v140_v21 = vsel %vm139_vm0, %v136_v13, %v138_v20  ;;  %v141_v22 = vsel %vm139_vm0, %v138_v20, %v136_v13 }
  0xa0   :  { %v155_v26 = vmul.f32 %v148_v15, %v141_v22  ;;  %v156_v27 = vmul.f32 %v152_v16, %v140_v21  ;;  %v291_v15 = vrot.slane %v286_v5, %v1658_v10  ;;  %v295_v16 = vrot.slane %v286_v5, %v1660_v11 }
  0xa2   :  { %v159_v30 = vrot.slane %v155_v26, 4  ;;  %v160_v31 = vrot.slane %v156_v27, 4  ;;  %v305_v32 = vpop.permute.xlu1 %304  ;;  %v84_v33 = vpop.permute.xlu0 %83  ;;  %v175_v26 = vld [vmem:[#allocation7 + $0x5] ss:$8 sm:$0x3] }
  0xa3   :  { %v306_v36 = vsel %vm85_vm1, %v303_v19, %v305_v32  ;;  %v307_v37 = vsel %vm85_vm1, %v305_v32, %v303_v19  ;;  %v86_v38 = vsel %vm85_vm1, %v82_v14, %v84_v33  ;;  %v87_v39 = vsel %vm85_vm1, %v84_v33, %v82_v14 }
  0xa4   :  { %163 = vst [vmem:[#allocation2 + $0x20] sm:$0xf0] %v159_v30  ;;  %164 = vst [vmem:[#allocation2 + $0x28] sm:$0xf0] %v160_v31  ;;  %v320_v40 = vmul.f32 %v313_v23, %v307_v37  ;;  %v321_v41 = vmul.f32 %v317_v24, %v306_v36  ;;  %v101_v42 = vmul.f32 %v94_v28, %v87_v39 }
  0xa5   :  { %v102_v43 = vmul.f32 %v98_v29, %v86_v38  ;;  %v341_v24 = vrot.slane %v336_v17, %v1658_v10  ;;  %v180_v33 = vrot.slane %v175_v26, %v1658_v10  ;;  %v229_v36 = vld [vmem:[#allocation7 + $0x7] ss:$8 sm:$0x3] }
  0xa6   :  { %v324_v45 = vrot.slane %v320_v40, 4  ;;  %v325_v46 = vrot.slane %v321_v41, 4  ;;  %v105_v47 = vrot.slane %v101_v42, 4  ;;  %v355_v49 = vpop.permute.xlu1 %354  ;;  %v353_v50 = vpop.permute.xlu0 %352 }
  0xa7   :  { %v106_v48 = vrot.slane %v102_v43, 4  ;;  %v356_v51 = vsel %vm139_vm0, %v353_v50, %v355_v49  ;;  %v357_v52 = vsel %vm139_vm0, %v355_v49, %v353_v50  ;;  %v238_v49 = vrot.slane %v229_v36, %v1660_v11  ;;  %v388_v50 = vld [vmem:[#allocation7 + $0x5] ss:$8 sm:$0x3] }
  0xa8   :  { %328 = vst [vmem:[#allocation2 + $0x10] sm:$0xf0] %v324_v45  ;;  %329 = vst [vmem:[#allocation2 + $0x18] sm:$0xf0] %v325_v46  ;;  %v370_v53 = vmul.f32 %v363_v34, %v357_v52  ;;  %v371_v54 = vmul.f32 %v367_v35, %v356_v51  ;;  %v184_v34 = vrot.slane %v175_v26, %v1660_v11 }
  0xa9   :  { %109 = vst [vmem:[#allocation2] sm:$0xf0] %v105_v47  ;;  %110 = vst [vmem:[#allocation2 + $0x8] sm:$0xf0] %v106_v48  ;;  %v234_v48 = vrot.slane %v229_v36, %v1658_v10 }
  0xaa   :  { %v374_v58 = vrot.slane %v370_v53, 4  ;;  %v375_v59 = vrot.slane %v371_v54, 4  ;;  %v59_v60 = vpop.permute.xlu1 %58  ;;  %v57_v61 = vpop.permute.xlu0 %56 }
  0xab   :  { %v63_v62 = vsel %vm62_vm2, %v57_v61, %v59_v60  ;;  %v64_v63 = vsel %vm62_vm2, %v59_v60, %v57_v61  ;;  %v397_v60 = vrot.slane %v388_v50, %v1660_v11 }
  0xac   :  { %378 = vst [vmem:[#allocation2 + $0x30] sm:$0xf0] %v374_v58  ;;  %379 = vst [vmem:[#allocation2 + $0x38] sm:$0xf0] %v375_v59  ;;  %v77_v0 = vmul.f32 %v70_v55, %v64_v63  ;;  %v78_v1 = vmul.f32 %v74_v56, %v63_v62  ;;  %v393_v59 = vrot.slane %v388_v50, %v1658_v10 }
  0xad   :  { %v438_v62 = vld [vmem:[#allocation7 + $0x7] ss:$8 sm:$0x3] }
  0xae   :  { %79 = vst [vmem:[#allocation2] sm:$0xf] %v77_v0  ;;  %80 = vst [vmem:[#allocation2 + $0x8] sm:$0xf] %v78_v1  ;;  %v114_v6 = vpop.permute.xlu1 %113  ;;  %v112_v7 = vpop.permute.xlu0 %111  ;;  %v447_v17 = vrot.slane %v438_v62, %v1660_v11 }
  0xaf   :  { %v116_v8 = vsel %vm115_vm3, %v112_v7, %v114_v6  ;;  %v117_v12 = vsel %vm115_vm3, %v114_v6, %v112_v7 }
  0xb0   :  { %v131_v13 = vmul.f32 %v124_v2, %v117_v12  ;;  %v132_v14 = vmul.f32 %v128_v3, %v116_v8 }
  0xb2   :  { %133 = vst [vmem:[#allocation2 + $0x20] sm:$0xf] %v131_v13  ;;  %134 = vst [vmem:[#allocation2 + $0x28] sm:$0xf] %v132_v14  ;;  %v283_v18 = vpop.permute.xlu1 %282  ;;  %v281_v19 = vpop.permute.xlu0 %280 }
  0xb3   :  { %v284_v20 = vsel %vm62_vm2, %v281_v19, %v283_v18  ;;  %v285_v21 = vsel %vm62_vm2, %v283_v18, %v281_v19  ;;  %v205_v18 = vld [vmem:[#allocation7 + $0x6] ss:$8 sm:$0x3] }
  0xb4   :  { %v298_v22 = vmul.f32 %v291_v15, %v285_v21  ;;  %v299_v23 = vmul.f32 %v295_v16, %v284_v20  ;;  %v443_v16 = vrot.slane %v438_v62, %v1658_v10 }
  0xb5   :  { %v484_v35 = vld [vmem:[#allocation2 + $0x8] sm:$0xff]  ;;  %v483_v38 = vld [vmem:[#allocation2] sm:$0xff] }
  0xb6   :  { %300 = vst [vmem:[#allocation2 + $0x10] sm:$0xf] %v298_v22  ;;  %301 = vst [vmem:[#allocation2 + $0x18] sm:$0xf] %v299_v23  ;;  %v333_v27 = vpop.permute.xlu1 %332  ;;  %v331_v28 = vpop.permute.xlu0 %330 }
  0xb7   :  { %v334_v29 = vsel %vm115_vm3, %v331_v28, %v333_v27  ;;  %v335_v30 = vsel %vm115_vm3, %v333_v27, %v331_v28  ;;  %v210_v27 = vrot.slane %v205_v18, %v1658_v10  ;;  %v214_v28 = vrot.slane %v205_v18, %v1660_v11 }
  0xb8   :  { %v348_v31 = vmul.f32 %v341_v24, %v335_v30  ;;  %v349_v32 = vmul.f32 %v345_v25, %v334_v29  ;;  %v416_v29 = vld [vmem:[#allocation7 + $0x6] ss:$8 sm:$0x3] }
  0xb9   :  { %v488_v37 = vld [vmem:[#allocation2 + $0x28] sm:$0xff]  ;;  %v487_v39 = vld [vmem:[#allocation2 + $0x20] sm:$0xff] }
  0xba   :  { %350 = vst [vmem:[#allocation2 + $0x30] sm:$0xf] %v348_v31  ;;  %351 = vst [vmem:[#allocation2 + $0x38] sm:$0xf] %v349_v32  ;;  %v170_v40 = vpop.permute.xlu1 %169  ;;  %v168_v41 = vpop.permute.xlu0 %167  ;;  %v1391_v42 = vpack.c.bf16 %v488_v37, %v484_v35  ;;  %v1393_v43 = vpack.c.bf16 %v487_v39, %v483_v38  ;;  %v421_v38 = vrot.slane %v416_v29, %v1658_v10 }
  0xbb   :  { %v172_v44 = vsel %vm171_vm4, %v168_v41, %v170_v40  ;;  %v173_v45 = vsel %vm171_vm4, %v170_v40, %v168_v41  ;;  %v425_v39 = vrot.slane %v416_v29, %v1660_v11  ;;  %v259_v40 = vld [vmem:[#allocation7 + $0x10] ss:$8 sm:$0x3] }
  0xbc   :  { %v187_v46 = vmul.f32 %v180_v33, %v172_v44  ;;  %v188_v47 = vmul.f32 %v184_v34, %v173_v45  ;;  %1392 = vmatprep.subr.bf16.mxu0 %v1391_v42 }
  0xbd   :  { %1394 = vmatpush1.bf16.msra.mxu0 %v1393_v43  ;;  %v486_v61 = vld [vmem:[#allocation2 + $0x18] sm:$0xff]  ;;  %v485_v0 = vld [vmem:[#allocation2 + $0x10] sm:$0xff] }
  0xbe   :  { %v191_v51 = vrot.slane %v187_v46, 4  ;;  %v192_v52 = vrot.slane %v188_v47, 4  ;;  %v224_v53 = vpop.permute.xlu1 %223  ;;  %v222_v54 = vpop.permute.xlu0 %221  ;;  %v264_v47 = vrot.slane %v259_v40, %v1658_v10 }
  0xbf   :  { %v226_v55 = vsel %vm225_vm5, %v222_v54, %v224_v53  ;;  %v227_v56 = vsel %vm225_vm5, %v224_v53, %v222_v54 }
  0xc0   :  { %195 = vst [vmem:[#allocation2 + $0x40] sm:$0xf0] %v191_v51  ;;  %196 = vst [vmem:[#allocation2 + $0x48] sm:$0xf0] %v192_v52  ;;  %v241_v57 = vmul.f32 %v234_v48, %v226_v55  ;;  %v242_v58 = vmul.f32 %v238_v49, %v227_v56  ;;  %v268_v48 = vrot.slane %v259_v40, %v1660_v11 }
  0xc1   :  { %v490_v63 = vld [vmem:[#allocation2 + $0x38] sm:$0xff]  ;;  %v489_v1 = vld [vmem:[#allocation2 + $0x30] sm:$0xff]  ;;  %v466_v49 = vld [vmem:[#allocation7 + $0x10] ss:$8 sm:$0x3] }
  0xc2   :  { %v245_v2 = vrot.slane %v241_v57, 4  ;;  %v246_v3 = vrot.slane %v242_v58, 4  ;;  %v385_v5 = vpop.permute.xlu1 %384  ;;  %v383_v6 = vpop.permute.xlu0 %382  ;;  %v1399_v7 = vpack.c.bf16 %v490_v63, %v486_v61  ;;  %v1401_v8 = vpack.c.bf16 %v489_v1, %v485_v0 }
  0xc3   :  { %v386_v12 = vsel %vm171_vm4, %v383_v6, %v385_v5  ;;  %v387_v13 = vsel %vm171_vm4, %v385_v5, %v383_v6  ;;  %v471_v56 = vrot.slane %v466_v49, %v1658_v10  ;;  %v475_v57 = vrot.slane %v466_v49, %v1660_v11  ;;  %v1137_v49 = vld [vmem:[%s1925_s5] sm:$0xf] }
  0xc4   :  { %249 = vst [vmem:[#allocation2 + $0x60] sm:$0xf0] %v245_v2  ;;  %250 = vst [vmem:[#allocation2 + $0x68] sm:$0xf0] %v246_v3  ;;  %v400_v14 = vmul.f32 %v393_v59, %v386_v12  ;;  %v401_v15 = vmul.f32 %v397_v60, %v387_v13  ;;  %1400 = vmatprep.subr.bf16.mxu1 %v1399_v7 }
  0xc5   :  { %1402 = vmatpush1.bf16.msra.mxu1 %v1401_v8 }
  0xc6   :  { %v404_v19 = vrot.slane %v400_v14, 4  ;;  %v405_v20 = vrot.slane %v401_v15, 4  ;;  %v435_v21 = vpop.permute.xlu1 %434  ;;  %v433_v22 = vpop.permute.xlu0 %432 }
  0xc7   :  { %v436_v23 = vsel %vm225_vm5, %v433_v22, %v435_v21  ;;  %v437_v24 = vsel %vm225_vm5, %v435_v21, %v433_v22  ;;  %v492_v58 = vld [vmem:[#allocation2 + $0x48] sm:$0xff]  ;;  %v491_v60 = vld [vmem:[#allocation2 + $0x40] sm:$0xff] }
  0xc8   :  { %408 = vst [vmem:[#allocation2 + $0x50] sm:$0xf0] %v404_v19  ;;  %409 = vst [vmem:[#allocation2 + $0x58] sm:$0xf0] %v405_v20  ;;  %v450_v25 = vmul.f32 %v443_v16, %v436_v23  ;;  %v451_v26 = vmul.f32 %v447_v17, %v437_v24  ;;  %v482_v16 = vld [vmem:[%s1922_s2] sm:$0x3] }
  0xca   :  { %v454_v30 = vrot.slane %v450_v25, 4  ;;  %v455_v31 = vrot.slane %v451_v26, 4  ;;  %v200_v32 = vpop.permute.xlu1 %199  ;;  %v198_v33 = vpop.permute.xlu0 %197 }
  0xcb   :  { %v202_v34 = vsel %vm201_vm6, %v198_v33, %v200_v32  ;;  %v203_v35 = vsel %vm201_vm6, %v200_v32, %v198_v33 }
  0xcc   :  { %458 = vst [vmem:[#allocation2 + $0x70] sm:$0xf0] %v454_v30  ;;  %459 = vst [vmem:[#allocation2 + $0x78] sm:$0xf0] %v455_v31  ;;  %v217_v36 = vmul.f32 %v210_v27, %v202_v34  ;;  %v218_v37 = vmul.f32 %v214_v28, %v203_v35 }
  0xce   :  { %219 = vst [vmem:[#allocation2 + $0x60] sm:$0xf] %v217_v36  ;;  %220 = vst [vmem:[#allocation2 + $0x68] sm:$0xf] %v218_v37  ;;  %v413_v41 = vpop.permute.xlu1 %412  ;;  %v411_v42 = vpop.permute.xlu0 %410 }
  0xcf   :  { %v414_v43 = vsel %vm201_vm6, %v411_v42, %v413_v41  ;;  %v415_v44 = vsel %vm201_vm6, %v413_v41, %v411_v42  ;;  %v494_v7 = vld [vmem:[#allocation2 + $0x58] sm:$0xff]  ;;  %v493_v12 = vld [vmem:[#allocation2 + $0x50] sm:$0xff] }
  0xd0   :  { %v428_v45 = vmul.f32 %v421_v38, %v414_v43  ;;  %v429_v46 = vmul.f32 %v425_v39, %v415_v44 }
  0xd2   :  { %430 = vst [vmem:[#allocation2 + $0x70] sm:$0xf] %v428_v45  ;;  %431 = vst [vmem:[#allocation2 + $0x78] sm:$0xf] %v429_v46  ;;  %v254_v50 = vpop.permute.xlu1 %253  ;;  %v252_v51 = vpop.permute.xlu0 %251 }
  0xd3   :  { %v256_v52 = vsel %vm255_vm7, %v252_v51, %v254_v50  ;;  %v257_v53 = vsel %vm255_vm7, %v254_v50, %v252_v51  ;;  %v724_v50 = vld [vmem:[#allocation7 + $0x1] ss:$8 sm:$0x3] }
  0xd4   :  { %v271_v54 = vmul.f32 %v264_v47, %v256_v52  ;;  %v272_v55 = vmul.f32 %v268_v48, %v257_v53  ;;  %v729_v53 = vrot.slane %v724_v50, %v1658_v10 }
  0xd5   :  { %v496_v59 = vld [vmem:[#allocation2 + $0x68] sm:$0xff]  ;;  %v495_v61 = vld [vmem:[#allocation2 + $0x60] sm:$0xff] }
  0xd6   :  { %273 = vst [vmem:[#allocation2 + $0x80] sm:$0xf] %v271_v54  ;;  %274 = vst [vmem:[#allocation2 + $0x88] sm:$0xf] %v272_v55  ;;  %v463_v62 = vpop.permute.xlu1 %462  ;;  %v461_v63 = vpop.permute.xlu0 %460  ;;  %v1395_v0 = vpack.c.bf16 %v496_v59, %v492_v58  ;;  %v1397_v1 = vpack.c.bf16 %v495_v61, %v491_v60  ;;  %v733_v54 = vrot.slane %v724_v50, %v1660_v11 }
  0xd7   :  { %v464_v2 = vsel %vm255_vm7, %v461_v63, %v463_v62  ;;  %v465_v3 = vsel %vm255_vm7, %v463_v62, %v461_v63  ;;  %v752_v55 = vld [vmem:[#allocation7 + $0x2] ss:$8 sm:$0x3] }
  0xd8   :  { %v478_v5 = vmul.f32 %v471_v56, %v464_v2  ;;  %v479_v6 = vmul.f32 %v475_v57, %v465_v3  ;;  %1396 = vmatprep.subr.bf16.mxu0 %v1395_v0  ;;  %v757_v62 = vrot.slane %v752_v55, %v1658_v10  ;;  %v761_v63 = vrot.slane %v752_v55, %v1660_v11  ;;  %v780_v0 = vld [vmem:[#allocation7 + $0x3] ss:$8 sm:$0x3] }
  0xd9   :  { %1398 = vmatpush1.bf16.msra.mxu0 %v1397_v1  ;;  %v498_v8 = vld [vmem:[#allocation2 + $0x78] sm:$0xff]  ;;  %v497_v13 = vld [vmem:[#allocation2 + $0x70] sm:$0xff] }
  0xda   :  { %480 = vst [vmem:[#allocation2 + $0x90] sm:$0xf] %v478_v5  ;;  %481 = vst [vmem:[#allocation2 + $0x98] sm:$0xf] %v479_v6  ;;  %v1403_v14 = vpack.c.bf16 %v498_v8, %v494_v7  ;;  %v1405_v15 = vpack.c.bf16 %v497_v13, %v493_v12  ;;  %v785_v13 = vrot.slane %v780_v0, %v1658_v10 }
  0xdc   :  { %1404 = vmatprep.subr.bf16.mxu1 %v1403_v14  ;;  %v789_v14 = vrot.slane %v780_v0, %v1660_v11 }
  0xdd   :  { %1406 = vmatpush1.bf16.msra.mxu1 %v1405_v15  ;;  %v500_v17 = vld [vmem:[#allocation2 + $0x88] sm:$0xf]  ;;  %v499_v18 = vld [vmem:[#allocation2 + $0x80] sm:$0xf] }
  0xde   :  { %1371 = vmatprep.subr.msk.mxu0 %vm513_vm8, %v500_v17  ;;  %v810_v15 = vld [vmem:[#allocation7 + $0x5] ss:$8 sm:$0x3] }
  0xdf   :  { %1372 = vmatpush1.msk.msra.mxu0 %vm513_vm8, %v499_v18 }
  0xe0   :  { %1373 = vmatmul.mubr.msk.f32.vlgmr.msra.gmra.mrb[0].mxu0 %vm509_vm9, %v482_v16 }
  0xe1   :  { %v502_v19 = vld [vmem:[#allocation2 + $0x98] sm:$0xf]  ;;  %v501_v20 = vld [vmem:[#allocation2 + $0x90] sm:$0xf]  ;;  %1224 = vmatprep.mubr.f32.mxu0 %v1552_v4 }
  0xe2   :  { %1374 = vmatprep.subr.msk.mxu1 %vm513_vm8, %v502_v19 }
  0xe3   :  { %1375 = vmatpush1.msk.msra.mxu1 %vm513_vm8, %v501_v20 }
  0xe4   :  { %1376 = vmatmul.mubr.msk.f32.vlgmr.msra.gmra.mrb[0].mxu1 %vm509_vm9, %v482_v16 }
  0xe5   :  { %1295 = vmatprep.mubr.f32.mxu1 %v1552_v4 }
  0xe7   :  { %v507_v21 = vpop.permute.xlu0 %506 }
 0x1b3   :  { %v592_v22 = vpop.f32.mrb[0].mxu0 }
 0x1b4   :  { %v593_v23 = vadd.f32 %v592_v22, %v507_v21  ;;  %v594_v24 = vpop.f32.mrb[1].mxu0 }
 0x1b5   :  { %v595_v25 = vadd.f32 %v594_v24, %v507_v21  ;;  %v815_v24 = vrot.slane %v810_v15, %v1658_v10 }
 0x1b6   :  { %v1377_v26 = vmul.f32 -1.442695, %v593_v23 }
 0x1b7   :  { %v1378_v27 = vmul.f32 -1.442695, %v595_v25  ;;  %v663_v28 = vpop.f32.mrb[0].mxu1 }
 0x1b8   :  { %1436 = vpow2.f32 %v1377_v26  ;;  %v664_v29 = vadd.f32 %v663_v28, %v507_v21  ;;  %v665_v30 = vpop.f32.mrb[1].mxu1  ;;  %v838_v26 = vld [vmem:[#allocation7 + $0x6] ss:$8 sm:$0x3] }
 0x1b9   :  { %1438 = vpow2.f32 %v1378_v27  ;;  %v666_v31 = vadd.f32 %v665_v30, %v507_v21 }
 0x1ba   :  { %v1379_v32 = vmul.f32 -1.442695, %v664_v29 }
 0x1bb   :  { %v1380_v33 = vmul.f32 -1.442695, %v666_v31 }
 0x1bc   :  { %1440 = vpow2.f32 %v1379_v32 }
 0x1bd   :  { %1442 = vpow2.f32 %v1380_v33 }
 0x1c2   :  { %v1437_v34 = vpop.eup %1436 }
 0x1c3   :  { %v1439_v35 = vpop.eup %1438  ;;  %v680_v4 = vadd.f32 1.0, %v1437_v34 }
 0x1c4   :  { %v681_v36 = vadd.f32 1.0, %v1439_v35  ;;  %v843_v35 = vrot.slane %v838_v26, %v1658_v10 }
 0x1c5   :  { %1444 = vrcp.f32 %v680_v4  ;;  %v847_v4 = vrot.slane %v838_v26, %v1660_v11 }
 0x1c6   :  { %v1441_v37 = vpop.eup %1440  ;;  %1446 = vrcp.f32 %v681_v36  ;;  %v866_v36 = vld [vmem:[#allocation7 + $0x7] ss:$8 sm:$0x3] }
 0x1c7   :  { %v1443_v38 = vpop.eup %1442  ;;  %v682_v39 = vadd.f32 1.0, %v1441_v37 }
 0x1c8   :  { %v683_v40 = vadd.f32 1.0, %v1443_v38 }
 0x1c9   :  { %1448 = vrcp.f32 %v682_v39 }
 0x1ca   :  { %1450 = vrcp.f32 %v683_v40 }
 0x1cf   :  { %v1445_v41 = vpop.eup %1444 }
 0x1d0   :  { %v1447_v42 = vpop.eup %1446  ;;  %v692_v43 = vmul.f32 %v1445_v41, %v593_v23 }
 0x1d1   :  { %v693_v44 = vmul.f32 %v1447_v42, %v595_v25  ;;  %v819_v25 = vrot.slane %v810_v15, %v1660_v11 }
 0x1d2   :  { %802 = vst [vmem:[#allocation3 + $0x20] sm:$0x3] %v692_v43  ;;  %746 = vrot.lane.b32.xlu0 %v692_v43, %s1548_s25  ;;  %718 = vrot.lane.b32.xlu1 %v692_v43, %s1545_s21 }
 0x1d3   :  { %v1449_v45 = vpop.eup %1448  ;;  %803 = vst [vmem:[#allocation3 + $0x28] sm:$0x3] %v693_v44 }
 0x1d4   :  { %v1451_v46 = vpop.eup %1450  ;;  %v694_v47 = vmul.f32 %v1449_v45, %v664_v29  ;;  %v871_v45 = vrot.slane %v866_v36, %v1658_v10 }
 0x1d5   :  { %v695_v48 = vmul.f32 %v1451_v46, %v666_v31  ;;  %v875_v46 = vrot.slane %v866_v36, %v1660_v11 }
 0x1d6   :  { %1016 = vst [vmem:[#allocation3 + $0x30] sm:$0x3] %v694_v47  ;;  %774 = vrot.lane.b32.xlu0 %v692_v43, %s1546_s24  ;;  %720 = vrot.lane.b32.xlu1 %v693_v44, %s1545_s21 }
 0x1d7   :  { %1017 = vst [vmem:[#allocation3 + $0x38] sm:$0x3] %v695_v48 }
 0x1da   :  { %804 = vrot.lane.b32.xlu0 %v692_v43, %s1549_s26  ;;  %748 = vrot.lane.b32.xlu1 %v693_v44, %s1548_s25 }
 0x1de   :  { %832 = vrot.lane.b32.xlu0 %v692_v43, %s1551_s28  ;;  %776 = vrot.lane.b32.xlu1 %v693_v44, %s1546_s24 }
 0x1e2   :  { %860 = vrot.lane.b32.xlu0 %v692_v43, %s1550_s27  ;;  %806 = vrot.lane.b32.xlu1 %v693_v44, %s1549_s26 }
 0x1e6   :  { %932 = vrot.lane.b32.xlu0 %v694_v47, %s1545_s21  ;;  %834 = vrot.lane.b32.xlu1 %v693_v44, %s1551_s28 }
 0x1ea   :  { %960 = vrot.lane.b32.xlu0 %v694_v47, %s1548_s25  ;;  %862 = vrot.lane.b32.xlu1 %v693_v44, %s1550_s27 }
 0x1ee   :  { %988 = vrot.lane.b32.xlu0 %v694_v47, %s1546_s24  ;;  %934 = vrot.lane.b32.xlu1 %v695_v48, %s1545_s21 }
 0x1f2   :  { %1018 = vrot.lane.b32.xlu0 %v694_v47, %s1549_s26  ;;  %962 = vrot.lane.b32.xlu1 %v695_v48, %s1548_s25 }
 0x1f6   :  { %1046 = vrot.lane.b32.xlu0 %v694_v47, %s1551_s28  ;;  %990 = vrot.lane.b32.xlu1 %v695_v48, %s1546_s24 }
 0x1fa   :  { %1074 = vrot.lane.b32.xlu0 %v694_v47, %s1550_s27  ;;  %1020 = vrot.lane.b32.xlu1 %v695_v48, %s1549_s26 }
 0x1fe   :  { %696 = vrot.lane.b32.xlu0 %v692_v43, %s1547_s1  ;;  %1048 = vrot.lane.b32.xlu1 %v695_v48, %s1551_s28 }
 0x202   :  { %910 = vrot.lane.b32.xlu0 %v694_v47, %s1547_s1  ;;  %1076 = vrot.lane.b32.xlu1 %v695_v48, %s1550_s27 }
 0x206   :  { %888 = vrot.lane.b32.xlu0 %v692_v43, %s1553_s29  ;;  %698 = vrot.lane.b32.xlu1 %v693_v44, %s1547_s1 }
 0x20a   :  { %1102 = vrot.lane.b32.xlu0 %v694_v47, %s1553_s29  ;;  %912 = vrot.lane.b32.xlu1 %v695_v48, %s1547_s1  ;;  %v938_v47 = vld [vmem:[#allocation7 + $0x1] ss:$8 sm:$0x3] }
 0x20e   :  { %1140 = vperm.xlu0 %1431, %v1137_v49   ;;  %890 = vrot.lane.b32.xlu1 %v693_v44, %s1553_s29 }
 0x212   :  { %1104 = vrot.lane.b32.xlu1 %v695_v48, %s1553_s29 }
 0x244   :  { %v747_v51 = vpop.permute.xlu0 %746  ;;  %v719_v52 = vpop.permute.xlu1 %718 }
 0x248   :  { %v775_v56 = vpop.permute.xlu0 %774  ;;  %v721_v57 = vpop.permute.xlu1 %720 }
 0x249   :  { %v722_v58 = vsel %vm85_vm1, %v719_v52, %v721_v57  ;;  %v723_v59 = vsel %vm85_vm1, %v721_v57, %v719_v52  ;;  %v947_v57 = vrot.slane %v938_v47, %v1660_v11 }
 0x24a   :  { %v736_v60 = vmul.f32 %v729_v53, %v723_v59  ;;  %v737_v61 = vmul.f32 %v733_v54, %v722_v58  ;;  %v966_v58 = vld [vmem:[#allocation7 + $0x2] ss:$8 sm:$0x3] }
 0x24c   :  { %v740_v1 = vrot.slane %v736_v60, 6  ;;  %v741_v2 = vrot.slane %v737_v61, 6  ;;  %v805_v3 = vpop.permute.xlu0 %804  ;;  %v749_v5 = vpop.permute.xlu1 %748 }
 0x24d   :  { %v750_v6 = vsel %vm115_vm3, %v747_v51, %v749_v5  ;;  %v751_v7 = vsel %vm115_vm3, %v749_v5, %v747_v51  ;;  %v975_v5 = vrot.slane %v966_v58, %v1660_v11 }
 0x24e   :  { %744 = vst [vmem:[#allocation3] sm:$0xc] %v740_v1  ;;  %745 = vst [vmem:[#allocation3 + $0x8] sm:$0xc] %v741_v2  ;;  %v764_v8 = vmul.f32 %v757_v62, %v751_v7  ;;  %v765_v12 = vmul.f32 %v761_v63, %v750_v6 }
 0x24f   :  { %v994_v6 = vld [vmem:[#allocation7 + $0x3] ss:$8 sm:$0x3] }
 0x250   :  { %v768_v16 = vrot.slane %v764_v8, 4  ;;  %v769_v17 = vrot.slane %v765_v12, 4  ;;  %v833_v18 = vpop.permute.xlu0 %832  ;;  %v777_v19 = vpop.permute.xlu1 %776 }
 0x251   :  { %v778_v20 = vsel %vm139_vm0, %v775_v56, %v777_v19  ;;  %v779_v21 = vsel %vm139_vm0, %v777_v19, %v775_v56  ;;  %v943_v56 = vrot.slane %v938_v47, %v1658_v10  ;;  %v1003_v19 = vrot.slane %v994_v6, %v1660_v11 }
 0x252   :  { %772 = vst [vmem:[#allocation3] sm:$0x30] %v768_v16  ;;  %773 = vst [vmem:[#allocation3 + $0x8] sm:$0x30] %v769_v17  ;;  %v792_v22 = vmul.f32 %v785_v13, %v779_v21  ;;  %v793_v23 = vmul.f32 %v789_v14, %v778_v20 }
 0x253   :  { %v1024_v20 = vld [vmem:[#allocation7 + $0x5] ss:$8 sm:$0x3] }
 0x254   :  { %v796_v27 = vrot.slane %v792_v22, 2  ;;  %v797_v28 = vrot.slane %v793_v23, 2  ;;  %v861_v29 = vpop.permute.xlu0 %860  ;;  %v807_v30 = vpop.permute.xlu1 %806 }
 0x255   :  { %v808_v31 = vsel %vm171_vm4, %v805_v3, %v807_v30  ;;  %v809_v32 = vsel %vm171_vm4, %v807_v30, %v805_v3  ;;  %v971_v3 = vrot.slane %v966_v58, %v1658_v10  ;;  %v1033_v30 = vrot.slane %v1024_v20, %v1660_v11 }
 0x256   :  { %800 = vst [vmem:[#allocation3] sm:$0xc0] %v796_v27  ;;  %801 = vst [vmem:[#allocation3 + $0x8] sm:$0xc0] %v797_v28  ;;  %v822_v33 = vmul.f32 %v815_v24, %v808_v31  ;;  %v823_v34 = vmul.f32 %v819_v25, %v809_v32 }
 0x257   :  { %v1052_v31 = vld [vmem:[#allocation7 + $0x6] ss:$8 sm:$0x3] }
 0x258   :  { %v826_v37 = vrot.slane %v822_v33, 6  ;;  %v827_v38 = vrot.slane %v823_v34, 6  ;;  %v933_v39 = vpop.permute.xlu0 %932  ;;  %v835_v40 = vpop.permute.xlu1 %834 }
 0x259   :  { %v836_v41 = vsel %vm201_vm6, %v833_v18, %v835_v40  ;;  %v837_v42 = vsel %vm201_vm6, %v835_v40, %v833_v18  ;;  %v999_v18 = vrot.slane %v994_v6, %v1658_v10  ;;  %v1061_v40 = vrot.slane %v1052_v31, %v1660_v11 }
 0x25a   :  { %830 = vst [vmem:[#allocation3 + $0x20] sm:$0xc] %v826_v37  ;;  %831 = vst [vmem:[#allocation3 + $0x28] sm:$0xc] %v827_v38  ;;  %v850_v43 = vmul.f32 %v843_v35, %v836_v41  ;;  %v851_v44 = vmul.f32 %v847_v4, %v837_v42 }
 0x25b   :  { %v1080_v41 = vld [vmem:[#allocation7 + $0x7] ss:$8 sm:$0x3] }
 0x25c   :  { %v854_v48 = vrot.slane %v850_v43, 4  ;;  %v855_v49 = vrot.slane %v851_v44, 4  ;;  %v961_v50 = vpop.permute.xlu0 %960  ;;  %v863_v51 = vpop.permute.xlu1 %862 }
 0x25d   :  { %v864_v52 = vsel %vm225_vm5, %v861_v29, %v863_v51  ;;  %v865_v53 = vsel %vm225_vm5, %v863_v51, %v861_v29  ;;  %v1029_v29 = vrot.slane %v1024_v20, %v1658_v10  ;;  %v1089_v51 = vrot.slane %v1080_v41, %v1660_v11 }
 0x25e   :  { %858 = vst [vmem:[#allocation3 + $0x20] sm:$0x30] %v854_v48  ;;  %859 = vst [vmem:[#allocation3 + $0x28] sm:$0x30] %v855_v49  ;;  %v878_v54 = vmul.f32 %v871_v45, %v864_v52  ;;  %v879_v55 = vmul.f32 %v875_v46, %v865_v53 }
 0x25f   :  { %v702_v52 = vld [vmem:[#allocation7] ss:$8 sm:$0x3] }
 0x260   :  { %v882_v59 = vrot.slane %v878_v54, 2  ;;  %v883_v60 = vrot.slane %v879_v55, 2  ;;  %v989_v61 = vpop.permute.xlu0 %988  ;;  %v935_v62 = vpop.permute.xlu1 %934 }
 0x261   :  { %v936_v63 = vsel %vm85_vm1, %v933_v39, %v935_v62  ;;  %v937_v0 = vsel %vm85_vm1, %v935_v62, %v933_v39  ;;  %v1057_v39 = vrot.slane %v1052_v31, %v1658_v10  ;;  %v916_v62 = vld [vmem:[#allocation7] ss:$8 sm:$0x3] }
 0x262   :  { %886 = vst [vmem:[#allocation3 + $0x20] sm:$0xc0] %v882_v59  ;;  %887 = vst [vmem:[#allocation3 + $0x28] sm:$0xc0] %v883_v60  ;;  %v950_v1 = vmul.f32 %v943_v56, %v937_v0  ;;  %v951_v2 = vmul.f32 %v947_v57, %v936_v63  ;;  %v707_v60 = vrot.slane %v702_v52, %v1658_v10 }
 0x264   :  { %v954_v7 = vrot.slane %v950_v1, 6  ;;  %v955_v8 = vrot.slane %v951_v2, 6  ;;  %v1019_v12 = vpop.permute.xlu0 %1018  ;;  %v963_v13 = vpop.permute.xlu1 %962 }
 0x265   :  { %v964_v14 = vsel %vm115_vm3, %v961_v50, %v963_v13  ;;  %v965_v15 = vsel %vm115_vm3, %v963_v13, %v961_v50  ;;  %v1085_v50 = vrot.slane %v1080_v41, %v1658_v10  ;;  %v894_v13 = vld [vmem:[#allocation7 + $0x10] ss:$8 sm:$0x3] }
 0x266   :  { %958 = vst [vmem:[#allocation3 + $0x10] sm:$0xc] %v954_v7  ;;  %959 = vst [vmem:[#allocation3 + $0x18] sm:$0xc] %v955_v8  ;;  %v978_v16 = vmul.f32 %v971_v3, %v965_v15  ;;  %v979_v17 = vmul.f32 %v975_v5, %v964_v14  ;;  %v921_v8 = vrot.slane %v916_v62, %v1658_v10 }
 0x267   :  { %v899_v20 = vrot.slane %v894_v13, %v1658_v10 }
 0x268   :  { %v982_v21 = vrot.slane %v978_v16, 4  ;;  %v983_v22 = vrot.slane %v979_v17, 4  ;;  %v1047_v23 = vpop.permute.xlu0 %1046  ;;  %v991_v24 = vpop.permute.xlu1 %990 }
 0x269   :  { %v992_v25 = vsel %vm139_vm0, %v989_v61, %v991_v24  ;;  %v993_v26 = vsel %vm139_vm0, %v991_v24, %v989_v61  ;;  %v711_v61 = vrot.slane %v702_v52, %v1660_v11 }
 0x26a   :  { %986 = vst [vmem:[#allocation3 + $0x10] sm:$0x30] %v982_v21  ;;  %987 = vst [vmem:[#allocation3 + $0x18] sm:$0x30] %v983_v22  ;;  %v1006_v27 = vmul.f32 %v999_v18, %v993_v26  ;;  %v1007_v28 = vmul.f32 %v1003_v19, %v992_v25  ;;  %v903_v21 = vrot.slane %v894_v13, %v1660_v11 }
 0x26b   :  { %v1108_v22 = vld [vmem:[#allocation7 + $0x10] ss:$8 sm:$0x3] }
 0x26c   :  { %v1010_v32 = vrot.slane %v1006_v27, 2  ;;  %v1011_v33 = vrot.slane %v1007_v28, 2  ;;  %v1075_v34 = vpop.permute.xlu0 %1074  ;;  %v1021_v35 = vpop.permute.xlu1 %1020  ;;  %v1113_v28 = vrot.slane %v1108_v22, %v1658_v10 }
 0x26d   :  { %v1022_v4 = vsel %vm171_vm4, %v1019_v12, %v1021_v35  ;;  %v1023_v36 = vsel %vm171_vm4, %v1021_v35, %v1019_v12  ;;  %v925_v12 = vrot.slane %v916_v62, %v1660_v11 }
 0x26e   :  { %1014 = vst [vmem:[#allocation3 + $0x10] sm:$0xc0] %v1010_v32  ;;  %1015 = vst [vmem:[#allocation3 + $0x18] sm:$0xc0] %v1011_v33  ;;  %v1036_v37 = vmul.f32 %v1029_v29, %v1022_v4  ;;  %v1037_v38 = vmul.f32 %v1033_v30, %v1023_v36  ;;  %v1117_v29 = vrot.slane %v1108_v22, %v1660_v11  ;;  %v1130_v30 = vld [vmem:[#allocation3 + $0x28] sm:$0xff]  ;;  %v1129_v33 = vld [vmem:[#allocation3 + $0x20] sm:$0xff] }
 0x270   :  { %v1040_v42 = vrot.slane %v1036_v37, 6  ;;  %v1041_v43 = vrot.slane %v1037_v38, 6  ;;  %v1049_v44 = vpop.permute.xlu1 %1048  ;;  %v697_v47 = vpop.permute.xlu0 %696 }
 0x271   :  { %v1050_v45 = vsel %vm201_vm6, %v1047_v23, %v1049_v44  ;;  %v1051_v46 = vsel %vm201_vm6, %v1049_v44, %v1047_v23 }
 0x272   :  { %1044 = vst [vmem:[#allocation3 + $0x30] sm:$0xc] %v1040_v42  ;;  %1045 = vst [vmem:[#allocation3 + $0x38] sm:$0xc] %v1041_v43  ;;  %v1064_v48 = vmul.f32 %v1057_v39, %v1050_v45  ;;  %v1065_v49 = vmul.f32 %v1061_v40, %v1051_v46  ;;  %v1124_v45 = vld [vmem:[%s1924_s4] sm:$0xf] }
 0x273   :  { %s1555_s4 = smov [#allocation9]  }
 0x274   :  { %v1068_v53 = vrot.slane %v1064_v48, 4  ;;  %v1069_v54 = vrot.slane %v1065_v49, 4  ;;  %v1077_v55 = vpop.permute.xlu1 %1076  ;;  %v911_v63 = vpop.permute.xlu0 %910  ;;  %s1358_s13 = sshll.u32 %s1555_s4, 4  ;;  %s1359_s13 = int_to_ptr.vmem [resolvable:$true] %s1358_s13 }
 0x275   :  { %v1078_v56 = vsel %vm225_vm5, %v1075_v34, %v1077_v55  ;;  %v1079_v57 = vsel %vm225_vm5, %v1077_v55, %v1075_v34  ;;  %s1512_s14 = scalar_lea.vmem %s1359_s13, 256  ;;  %p1517_p3 = scmp.lt.s32.totalorder %s1359_s13, %s1359_s13 }
 0x276   :  { %1072 = vst [vmem:[#allocation3 + $0x30] sm:$0x30] %v1068_v53  ;;  %1073 = vst [vmem:[#allocation3 + $0x38] sm:$0x30] %v1069_v54  ;;  %v1092_v58 = vmul.f32 %v1085_v50, %v1078_v56  ;;  %v1093_v59 = vmul.f32 %v1089_v51, %v1079_v57  ;;  %p1513_p2 = scmp.ne.s32.totalorder %s1359_s13, %s1512_s14  ;;  %p1518_p4 = scmp.lt.s32.totalorder %s1512_s14, %s1512_s14 }
 0x278   :  { %v1096_v0 = vrot.slane %v1092_v58, 2  ;;  %v1097_v1 = vrot.slane %v1093_v59, 2  ;;  %v699_v2 = vpop.permute.xlu1 %698  ;;  %v889_v17 = vpop.permute.xlu0 %888  ;;  %p1519_p5 = por %p1518_p4, %p1517_p3 }
 0x279   :  { %v700_v3 = vsel %vm62_vm2, %v697_v47, %v699_v2  ;;  %v701_v5 = vsel %vm62_vm2, %v699_v2, %v697_v47 }
 0x27a   :  { %1100 = vst [vmem:[#allocation3 + $0x30] sm:$0xc0] %v1096_v0  ;;  %1101 = vst [vmem:[#allocation3 + $0x38] sm:$0xc0] %v1097_v1  ;;  %v714_v6 = vmul.f32 %v707_v60, %v701_v5  ;;  %v715_v7 = vmul.f32 %v711_v61, %v700_v3  ;;  %p1520_p6 = pnand %p1519_p5, %p1513_p2 }
 0x27c   :  { %716 = vst [vmem:[#allocation3] sm:$0x3] %v714_v6  ;;  %717 = vst [vmem:[#allocation3 + $0x8] sm:$0x3] %v715_v7  ;;  %v913_v14 = vpop.permute.xlu1 %912  ;;  %v1103_v34 = vpop.permute.xlu0 %1102  ;;  %v1330_v7 = vld [vmem:[#allocation4] sm:$0xff] }
 0x27d   :  { %v914_v15 = vsel %vm62_vm2, %v911_v63, %v913_v14  ;;  %v915_v16 = vsel %vm62_vm2, %v913_v14, %v911_v63 }
 0x27e   :  { %v928_v18 = vmul.f32 %v921_v8, %v915_v16  ;;  %v929_v19 = vmul.f32 %v925_v12, %v914_v15  ;;  %v1332_v12 = vcombine.high %v1330_v7, %v1330_v7  ;;  %v1341_v15 = vld [vmem:[#allocation4 + $0x8] sm:$0xff] }
 0x280   :  { %930 = vst [vmem:[#allocation3 + $0x10] sm:$0x3] %v928_v18  ;;  %931 = vst [vmem:[#allocation3 + $0x18] sm:$0x3] %v929_v19  ;;  %v891_v23 = vpop.permute.xlu1 %890 }
 0x281   :  { %v892_v24 = vsel %vm255_vm7, %v889_v17, %v891_v23  ;;  %v893_v25 = vsel %vm255_vm7, %v891_v23, %v889_v17  ;;  %v1132_v11 = vld [vmem:[#allocation3 + $0x38] sm:$0xff]  ;;  %v1131_v42 = vld [vmem:[#allocation3 + $0x30] sm:$0xff] }
 0x282   :  { %v906_v26 = vmul.f32 %v899_v20, %v892_v24  ;;  %v907_v27 = vmul.f32 %v903_v21, %v893_v25  ;;  %v1343_v20 = vcombine.high %v1341_v15, %v1341_v15 }
 0x283   :  { %v1126_v31 = vld [vmem:[#allocation3 + $0x8] sm:$0xff]  ;;  %v1125_v32 = vld [vmem:[#allocation3] sm:$0xff] }
 0x284   :  { %908 = vst [vmem:[#allocation3 + $0x40] sm:$0x3] %v906_v26  ;;  %909 = vst [vmem:[#allocation3 + $0x48] sm:$0x3] %v907_v27  ;;  %v1105_v35 = vpop.permute.xlu1 %1104  ;;  %v1407_v4 = vpack.c.bf16 %v1130_v30, %v1126_v31  ;;  %v1409_v36 = vpack.c.bf16 %v1129_v33, %v1125_v32 }
 0x285   :  { %v1106_v37 = vsel %vm255_vm7, %v1103_v34, %v1105_v35  ;;  %v1107_v38 = vsel %vm255_vm7, %v1105_v35, %v1103_v34 }
 0x286   :  { %v1120_v39 = vmul.f32 %v1113_v28, %v1106_v37  ;;  %v1121_v10 = vmul.f32 %v1117_v29, %v1107_v38  ;;  %1408 = vmatprep.subr.bf16.mxu0 %v1407_v4 }
 0x287   :  { %1410 = vmatpush1.bf16.msra.mxu0 %v1409_v36  ;;  %v1128_v40 = vld [vmem:[#allocation3 + $0x18] sm:$0xff]  ;;  %v1127_v41 = vld [vmem:[#allocation3 + $0x10] sm:$0xff] }
 0x288   :  { %1122 = vst [vmem:[#allocation3 + $0x50] sm:$0x3] %v1120_v39  ;;  %1123 = vst [vmem:[#allocation3 + $0x58] sm:$0x3] %v1121_v10  ;;  %v1411_v43 = vpack.c.bf16 %v1132_v11, %v1128_v40  ;;  %v1413_v44 = vpack.c.bf16 %v1131_v42, %v1127_v41 }
 0x28a   :  { %1412 = vmatprep.subr.bf16.mxu1 %v1411_v43 }
 0x28b   :  { %1414 = vmatpush1.bf16.msra.mxu1 %v1413_v44  ;;  %v1134_v9 = vld [vmem:[#allocation3 + $0x48] sm:$0x3]  ;;  %v1133_v46 = vld [vmem:[#allocation3 + $0x40] sm:$0x3] }
 0x28c   :  { %1381 = vmatprep.subr.msk.mxu0 %vm1147_vm10, %v1134_v9 }
 0x28d   :  { %1382 = vmatpush1.msk.msra.mxu0 %vm1147_vm10, %v1133_v46  ;;  %v1141_v49 = vpop.permute.xlu0 %1140 }
 0x28e   :  { %1383 = vmatmul.mubr.msk.f32.vlgmr.msra.gmra.mrb[2].mxu0 %vm1143_vm11, %v1124_v45 }
 0x28f   :  { %v1136_v47 = vld [vmem:[#allocation3 + $0x58] sm:$0x3]  ;;  %v1135_v48 = vld [vmem:[#allocation3 + $0x50] sm:$0x3] }
 0x290   :  { %1384 = vmatprep.subr.msk.mxu1 %vm1147_vm10, %v1136_v47 }
 0x291   :  { %1385 = vmatpush1.msk.msra.mxu1 %vm1147_vm10, %v1135_v48 }
 0x292   :  { %1386 = vmatmul.mubr.msk.f32.vlgmr.msra.gmra.mrb[2].mxu1 %vm1143_vm11, %v1124_v45 }
 0x361   :  { %v1226_v50 = vpop.f32.mrb[2].mxu0 }
 0x362   :  { %v1227_v51 = vadd.f32 %v1226_v50, %v1141_v49  ;;  %v1228_v52 = vpop.f32.mrb[3].mxu0 }
 0x363   :  { %v1229_v53 = vadd.f32 %v1228_v52, %v1141_v49 }
 0x364   :  { %v1387_v54 = vmul.f32 -1.442695, %v1227_v51 }
 0x365   :  { %v1388_v55 = vmul.f32 -1.442695, %v1229_v53  ;;  %v1297_v56 = vpop.f32.mrb[2].mxu1 }
 0x366   :  { %1452 = vpow2.f32 %v1387_v54  ;;  %v1298_v57 = vadd.f32 %v1297_v56, %v1141_v49  ;;  %v1299_v58 = vpop.f32.mrb[3].mxu1 }
 0x367   :  { %1454 = vpow2.f32 %v1388_v55  ;;  %v1300_v59 = vadd.f32 %v1299_v58, %v1141_v49 }
 0x368   :  { %v1389_v60 = vmul.f32 -1.442695, %v1298_v57 }
 0x369   :  { %v1390_v61 = vmul.f32 -1.442695, %v1300_v59 }
 0x36a   :  { %1456 = vpow2.f32 %v1389_v60 }
 0x36b   :  { %1458 = vpow2.f32 %v1390_v61 }
 0x370   :  { %v1453_v62 = vpop.eup %1452 }
 0x371   :  { %v1455_v63 = vpop.eup %1454  ;;  %v1314_v0 = vadd.f32 1.0, %v1453_v62 }
 0x372   :  { %v1315_v1 = vadd.f32 1.0, %v1455_v63 }
 0x373   :  { %1460 = vrcp.f32 %v1314_v0 }
 0x374   :  { %v1457_v2 = vpop.eup %1456  ;;  %1462 = vrcp.f32 %v1315_v1 }
 0x375   :  { %v1459_v3 = vpop.eup %1458  ;;  %v1316_v5 = vadd.f32 1.0, %v1457_v2 }
 0x376   :  { %v1317_v6 = vadd.f32 1.0, %v1459_v3 }
 0x377   :  { %1464 = vrcp.f32 %v1316_v5 }
 0x378   :  { %1466 = vrcp.f32 %v1317_v6 }
 0x37d   :  { %v1461_v8 = vpop.eup %1460 }
 0x37e   :  { %v1463_v13 = vpop.eup %1462  ;;  %v1326_v14 = vmul.f32 %v1461_v8, %v1227_v51 }
 0x37f   :  { %v1327_v16 = vmul.f32 %v1463_v13, %v1229_v53 }
 0x380   :  { %v1334_v17 = vadd.f32 %v1330_v7, %v1326_v14 }
 0x381   :  { %v1465_v18 = vpop.eup %1464  ;;  %v1335_v19 = vadd.f32 %v1332_v12, %v1327_v16 }
 0x382   :  { %v1467_v21 = vpop.eup %1466  ;;  %v1328_v22 = vmul.f32 %v1465_v18, %v1298_v57 }
 0x383   :  { %v1329_v23 = vmul.f32 %v1467_v21, %v1300_v59  ;;  %v1338_v24 = vcombine.low %v1334_v17, %v1335_v19 }
 0x384   :  { %v1345_v25 = vadd.f32 %v1341_v15, %v1328_v22 }
 0x385   :  { %v1346_v26 = vadd.f32 %v1343_v20, %v1329_v23  ;;  %1340 = vst [vmem:[#allocation9] sm:$0xff] %v1338_v24 }
 0x387   :  { %v1349_v27 = vcombine.low %v1345_v25, %v1346_v26 }
 0x389   :  { %1352 = vst [vmem:[#allocation9 + $0x8] sm:$0xff] %v1349_v27 }
 0x38a   :  { %1523 = shalt.err (!%p1520_p6)
}
 0x38b   :  { %s1524_s17 = scalar_lea.hbm %s1926_s6, 256 }
 0x38c   :  { %p1525_p7 = scmp.ne.s32.totalorder %s1926_s6, %s1524_s17  ;;  %p1528_p8 = scmp.lt.u32.totalorder %s1524_s17, %s1926_s6 }
 0x38e   :  { %p1530_p9 = pnand %p1528_p8, %p1525_p7 }
 0x390   :  { %1533 = shalt.err (!%p1530_p9)
}
 0x391   :  { %1364 = dma.vmem_to_hbm [thread:$0]  %s1359_s13, 256, %s1926_s6, [#allocation6], %s1541_s7, %s1541_s7, %s1542_s8  }
 0x392   :  { %1538 = dma.done.wait [#allocation6], 256  }
 0x393   :  { %1539 = vsyncadd [#allocation6], 4294967040 }
 0x394   :  { %1368 = vsyncpa [#allocation5], 1 }
 0x395   :  { %1369 = vsyncpa [#allocation8], 1 }
 0x396   :  { %1370 = vsyncpa [#allocation6], 1 }

</bundles_post_ra>
